<compile_context>
chip_gen: v7x
topology: tpu7x:2x2x1
jax: 0.10.0
libtpu: 0.0.40
codegen_flags: <defaults>
</compile_context>

<pallas_src>
import functools
import math

import jax
import jax.numpy as jnp
from jax import lax
from jax.experimental import pallas as pl
from jax.experimental.pallas import tpu as pltpu

F32 = jnp.float32
BF16 = jnp.bfloat16
LN_EPS = 1e-12   # HF ViT layer_norm_eps
BN_EPS = 1e-5    # torch.nn.BatchNorm1d default
VMEM_LIMIT = 64 * 1024 * 1024


def _vmem_full():
    # Whole-array VMEM-resident operand (invariant weights / biases):
    # loaded once, not re-fetched or double-buffered per grid step.
    return pl.BlockSpec(memory_space=pltpu.MemorySpace.VMEM)


# ---------------------------- Pallas kernels ---------------------------------

def _patch_embed_kernel(x_ref, w_ref, b_ref, o_ref):
    # One image per grid step: [N, C*P*P] bf16 @ [C*P*P, D] bf16 -> f32 + bias.
    y = jnp.dot(x_ref[0], w_ref[...],
                preferred_element_type=jnp.float32) + b_ref[...]
    o_ref[0] = y


def patch_embed(patches, w, b):
    B, N, CPP = patches.shape
    D = w.shape[1]
    return pl.pallas_call(
        _patch_embed_kernel,
        grid=(B,),
        out_shape=jax.ShapeDtypeStruct((B, N, D), F32),
        in_specs=[pl.BlockSpec((1, N, CPP), lambda b: (b, 0, 0)),
                  _vmem_full(), _vmem_full()],
        out_specs=pl.BlockSpec((1, N, D), lambda b: (b, 0, 0)),
        compiler_params=pltpu.CompilerParams(
            dimension_semantics=("parallel",)),
    )(patches, w, b.reshape(1, D))


def _attn_block_kernel(x_ref, g1_ref, b1_ref, wqkv_ref, bqkv_ref,
                       wo_ref, bo_ref, o_ref, *, D, H, eps, scale):
    # Fused: LN1 + stacked-QKV matmul + multi-head attention (head-batched
    # dot_general, no k.T, no per-head lane slicing / concat) + output
    # projection (head-batched + head-sum) + residual add.
    Dh = D // H
    x = x_ref[0]                                         # [T, D] f32 residual
    T = x.shape[0]

    # LayerNorm 1 (f32 statistics)
    mean = jnp.mean(x, axis=-1, keepdims=True)
    var = jnp.mean((x - mean) ** 2, axis=-1, keepdims=True)
    hn = (x - mean) * lax.rsqrt(var + eps) * g1_ref[...] + b1_ref[...]

    # Stacked QKV projection: one [T, D] @ [D, 3D] bf16 MXU matmul.
    qkv = jnp.dot(hn.astype(BF16), wqkv_ref[...],
                  preferred_element_type=jnp.float32) + bqkv_ref[...]  # [T, 3D] f32

    def split_heads(m):
        # [T, H*Dh] -> [H, T, Dh]: one bulk relayout per operand instead of
        # H misaligned 64-lane slices + per-head transposes.
        return jnp.swapaxes(m.reshape(T, H, Dh), 0, 1).astype(BF16)

    q = split_heads(qkv[:, :D])
    k = split_heads(qkv[:, D:2 * D])
    v = split_heads(qkv[:, 2 * D:3 * D])

    # Scores: batched over heads, contraction over Dh (MXU consumes the
    # "transposed" K operand natively - no explicit k.T materialisation).
    s = lax.dot_general(q, k, (((2,), (2,)), ((0,), (0,))),
                        preferred_element_type=jnp.float32) * scale     # [H, T, T]
    s = s - jnp.max(s, axis=-1, keepdims=True)            # softmax stats in f32
    p = jnp.exp(s)
    p = p * pl.reciprocal(jnp.sum(p, axis=-1, keepdims=True), approx=True)

    ctx = lax.dot_general(p.astype(BF16), v, (((2,), (1,)), ((0,), (0,))),
                          preferred_element_type=jnp.float32)           # [H, T, Dh]

    # Fused output projection: Wo stored head-major [H, Dh, D]; per-head matmul
    # then head-sum == concat(heads) @ Wo without materialising [T, H*Dh].
    proj = lax.dot_general(ctx.astype(BF16), wo_ref[...],
                           (((2,), (1,)), ((0,), (0,))),
                           preferred_element_type=jnp.float32)          # [H, T, D]
    a = jnp.sum(proj, axis=0) + bo_ref[...]

    o_ref[0] = x + a                                      # residual 1


def attn_block(x, p, *, D, H):
    B, T, _ = x.shape
    scale = 1.0 / math.sqrt(D // H)
    return pl.pallas_call(
        functools.partial(_attn_block_kernel, D=D, H=H, eps=LN_EPS, scale=scale),
        grid=(B,),
        out_shape=jax.ShapeDtypeStruct((B, T, D), F32),
        in_specs=[pl.BlockSpec((1, T, D), lambda b: (b, 0, 0))]
                 + [_vmem_full() for _ in range(6)],
        out_specs=pl.BlockSpec((1, T, D), lambda b: (b, 0, 0)),
        input_output_aliases={0: 0},                       # residual stream in place
        compiler_params=pltpu.CompilerParams(
            dimension_semantics=("parallel",),
            vmem_limit_bytes=VMEM_LIMIT),
    )(x,
      p["ln1_g"].reshape(1, D), p["ln1_b"].reshape(1, D),
      p["w_qkv"], p["b_qkv"].reshape(1, 3 * D),
      p["wo_heads"], p["bo"].reshape(1, D))


def _mlp_block_kernel(x_ref, g2_ref, b2_ref, w1_ref, bb1_ref, w2_ref, bb2_ref,
                      o_ref, *, eps):
    # Fused: LN2 + fc1(GELU) + fc2 + residual.
    x = x_ref[0]                                          # [T, D] f32 residual
    mean = jnp.mean(x, axis=-1, keepdims=True)
    var = jnp.mean((x - mean) ** 2, axis=-1, keepdims=True)
    h = (x - mean) * lax.rsqrt(var + eps) * g2_ref[...] + b2_ref[...]
    h = jnp.dot(h.astype(BF16), w1_ref[...],
                preferred_element_type=jnp.float32) + bb1_ref[...]
    # TODO(synk): HF ViT uses exact erf GELU; tanh-approx used here (small
    # documented numeric tolerance, guaranteed Mosaic lowering).
    h = jax.nn.gelu(h, approximate=True)
    h = jnp.dot(h.astype(BF16), w2_ref[...],
                preferred_element_type=jnp.float32) + bb2_ref[...]
    o_ref[0] = x + h                                      # residual 2


def mlp_block(x, p):
    B, T, D = x.shape
    Dm = p["w_fc1"].shape[1]
    return pl.pallas_call(
        functools.partial(_mlp_block_kernel, eps=LN_EPS),
        grid=(B,),
        out_shape=jax.ShapeDtypeStruct((B, T, D), F32),
        in_specs=[pl.BlockSpec((1, T, D), lambda b: (b, 0, 0))]
                 + [_vmem_full() for _ in range(6)],
        out_specs=pl.BlockSpec((1, T, D), lambda b: (b, 0, 0)),
        input_output_aliases={0: 0},
        compiler_params=pltpu.CompilerParams(
            dimension_semantics=("parallel",),
            vmem_limit_bytes=VMEM_LIMIT),
    )(x, p["ln2_g"].reshape(1, D), p["ln2_b"].reshape(1, D),
      p["w_fc1"], p["b_fc1"].reshape(1, Dm),
      p["w_fc2"], p["b_fc2"].reshape(1, D))


def _head_kernel(x_ref, lg_ref, lb_ref, wp_ref, bp_ref,
                 w1_ref, b1_ref, bg_ref, bb_ref, bm_ref, bv_ref,
                 w2_ref, b2_ref, o_ref, *, ln_eps, bn_eps):
    # Fused: final LayerNorm (CLS rows) + pooler (Linear+tanh) + classifier
    # (Dropout identity -> Linear -> ReLU -> BatchNorm1d eval -> Dropout -> Linear)
    x = x_ref[...]
    mean = jnp.mean(x, axis=-1, keepdims=True)
    var = jnp.mean((x - mean) ** 2, axis=-1, keepdims=True)
    h = (x - mean) * lax.rsqrt(var + ln_eps) * lg_ref[...] + lb_ref[...]
    pooled = jnp.tanh(jnp.dot(h.astype(BF16), wp_ref[...],
                              preferred_element_type=jnp.float32) + bp_ref[...])
    c = jnp.dot(pooled.astype(BF16), w1_ref[...],
                preferred_element_type=jnp.float32) + b1_ref[...]
    c = jnp.maximum(c, 0.0)
    c = (c - bm_ref[...]) * lax.rsqrt(bv_ref[...] + bn_eps)
    c = c * bg_ref[...] + bb_ref[...]
    o = jnp.dot(c.astype(BF16), w2_ref[...],
                preferred_element_type=jnp.float32) + b2_ref[...]
    o_ref[...] = o.astype(o_ref.dtype)


def head(cls_tok, p):
    B, D = cls_tok.shape
    hd = p["w_cls1"].shape[1]
    nc = p["w_cls2"].shape[1]
    return pl.pallas_call(
        functools.partial(_head_kernel, ln_eps=LN_EPS, bn_eps=BN_EPS),
        out_shape=jax.ShapeDtypeStruct((B, nc), F32),
        in_specs=[_vmem_full() for _ in range(13)],
        out_specs=_vmem_full(),
    )(cls_tok,
      p["ln_f_g"].reshape(1, D), p["ln_f_b"].reshape(1, D),
      p["w_pool"], p["b_pool"].reshape(1, D),
      p["w_cls1"], p["b_cls1"].reshape(1, hd),
      p["bn_gamma"].reshape(1, hd), p["bn_beta"].reshape(1, hd),
      p["bn_mean"].reshape(1, hd), p["bn_var"].reshape(1, hd),
      p["w_cls2"], p["b_cls2"].reshape(1, nc))


# ------------------------------- model glue -----------------------------------

def deepfake_vit_forward(x, params, cfg):
    B, C, Himg, Wimg = x.shape
    P, D, H, L = cfg["patch"], cfg["hidden"], cfg["heads"], cfg["layers"]
    Hp, Wp = Himg // P, Wimg // P
    N = Hp * Wp

    # Patch embedding: Conv2d(kernel=P, stride=P) == unfold + matmul.
    # Input cast to bf16 (kernel computes in bf16 anyway; halves the DMA bytes).
    patches = (x.reshape(B, C, Hp, P, Wp, P)
                 .transpose(0, 2, 4, 1, 3, 5)
                 .reshape(B, N, C * P * P)
                 .astype(BF16))
    emb = patch_embed(patches, params["w_patch"], params["b_patch"])  # [B,N,D] f32

    cls = jnp.broadcast_to(params["cls_token"], (B, 1, D)).astype(F32)
    h = jnp.concatenate([cls, emb], axis=1) + params["pos_embed"]     # [B,T,D] f32

    # Residual stream stays [B, T, D] f32: no per-layer pad / slice copies.
    for l in range(L):
        p = params["layers"][l]
        h = attn_block(h, p, D=D, H=H)
        h = mlp_block(h, p)

    # Final LN is per-row, so applying it only to the CLS rows (inside the
    # fused head kernel) matches taking the full-sequence LN then token 0.
    cls_tok = h[:, 0, :]
    return head(cls_tok, params)


# ----------------------------- parameter init ---------------------------------

def init_params(key, *, C, P, D, H, L, mlp_dim, num_classes, T, head_dim=512):
    assert D % H == 0
    Dh = D // H
    keys = iter(jax.random.split(key, 4 * L + 8))
    nk = lambda: next(keys)
    wbf = lambda k, s: (jax.random.normal(k, s, dtype=F32) * 0.02).astype(BF16)
    wf32 = lambda k, s: jax.random.normal(k, s, dtype=F32) * 0.02

    params = {
        # Matmul weights stored bf16 (MXU operands); biases / norms stay f32.
        "w_patch": wbf(nk(), (C * P * P, D)), "b_patch": jnp.zeros((D,), F32),
        "cls_token": wf32(nk(), (1, 1, D)),
        "pos_embed": wf32(nk(), (1, T, D)),
        "ln_f_g": jnp.ones((D,), F32), "ln_f_b": jnp.zeros((D,), F32),
        "w_pool": wbf(nk(), (D, D)), "b_pool": jnp.zeros((D,), F32),
        # classifier head (Linear(D,512) -> BN(512) -> Linear(512, num_classes))
        "w_cls1": wbf(nk(), (D, head_dim)), "b_cls1": jnp.zeros((head_dim,), F32),
        "bn_gamma": jnp.ones((head_dim,), F32), "bn_beta": jnp.zeros((head_dim,), F32),
        "bn_mean": jnp.zeros((head_dim,), F32), "bn_var": jnp.ones((head_dim,), F32),
        "w_cls2": wbf(nk(), (head_dim, num_classes)),
        "b_cls2": jnp.zeros((num_classes,), F32),
        "layers": [],
    }
    for _ in range(L):
        # Output projection stored head-major [H, Dh, D] (free re-layout at init)
        # so the attention kernel can fuse it as a head-batched matmul.
        wo = wbf(nk(), (D, D)).reshape(H, Dh, D)
        params["layers"].append({
            "ln1_g": jnp.ones((D,), F32), "ln1_b": jnp.zeros((D,), F32),
            # Q, K, V stacked along the output dim: one [D, 3D] matmul.
            "w_qkv": wbf(nk(), (D, 3 * D)), "b_qkv": jnp.zeros((3 * D,), F32),
            "wo_heads": wo, "bo": jnp.zeros((D,), F32),
            "ln2_g": jnp.ones((D,), F32), "ln2_b": jnp.zeros((D,), F32),
            "w_fc1": wbf(nk(), (D, mlp_dim)), "b_fc1": jnp.zeros((mlp_dim,), F32),
            "w_fc2": wbf(nk(), (mlp_dim, D)), "b_fc2": jnp.zeros((D,), F32),
        })
    return params


# ---------------------------------- main ---------------------------------------

if __name__ == "__main__":
    # Small, shape-consistent config (real google/vit-base-patch16-224 would be
    # C=3, P=16, D=768, H=12, L=12, mlp=3072; scaled down here).
    cfg = {"patch": 8, "hidden": 32, "heads": 4, "layers": 2, "mlp": 128,
           "num_classes": 2}
    B, C, IMG = 2, 3, 16
    N = (IMG // cfg["patch"]) ** 2
    T = N + 1

    key = jax.random.PRNGKey(0)
    pkey, xkey = jax.random.split(key)
    params = init_params(pkey, C=C, P=cfg["patch"], D=cfg["hidden"],
                         H=cfg["heads"], L=cfg["layers"], mlp_dim=cfg["mlp"],
                         num_classes=cfg["num_classes"], T=T)

    x = jax.random.normal(xkey, (B, C, IMG, IMG), dtype=F32)   # NCHW pixel_values

    fwd = jax.jit(functools.partial(deepfake_vit_forward, cfg=cfg))
    logits = fwd(x, params)
    jax.block_until_ready(logits)

    assert logits.shape == (B, cfg["num_classes"]) and logits.dtype == F32
    # TODO(synk): Dropout layers are identity and BatchNorm1d uses running stats
    # (inference semantics); training-mode stochastic dropout / batch-stat BN
    # not implemented.
    print("KERNEL_OK")
</pallas_src>

<mosaic_0001>
module attributes {stable_mosaic.version = 11 : i64} {
  func.func @_patch_embed_kernel(%arg0: i32, %arg1: memref<1x4x192xbf16, #tpu.memory_space<vmem>>, %arg2: memref<192x32xbf16, #tpu.memory_space<vmem>>, %arg3: memref<1x32xf32, #tpu.memory_space<vmem>>, %arg4: memref<1x4x32xf32, #tpu.memory_space<vmem>>) attributes {dimension_semantics = [#tpu.dimension_semantics<parallel>], iteration_bounds = array<i64: 2>, scalar_prefetch = 0 : i64, scratch_operands = 0 : i64, tpu.core_type = #tpu.core_type<tc>, window_params = [{transform_indices = @transform_0, window_bounds = array<i64: 1, 4, 192>}, {pipeline_mode = #tpu.pipeline_mode<synchronous>, transform_indices = @transform_1, window_bounds = array<i64: 192, 32>}, {pipeline_mode = #tpu.pipeline_mode<synchronous>, transform_indices = @transform_2, window_bounds = array<i64: 1, 32>}, {transform_indices = @transform_3, window_bounds = array<i64: 1, 4, 32>}]} {
    %c0 = arith.constant 0 : index
    %c0_0 = arith.constant 0 : index
    %c0_1 = arith.constant 0 : index
    %0 = vector.load %arg1[%c0, %c0_0, %c0_1] : memref<1x4x192xbf16, #tpu.memory_space<vmem>>, vector<1x4x192xbf16>
    %1 = vector.shape_cast %0 : vector<1x4x192xbf16> to vector<4x192xbf16>
    %c0_2 = arith.constant 0 : index
    %c0_3 = arith.constant 0 : index
    %2 = vector.load %arg2[%c0_2, %c0_3] : memref<192x32xbf16, #tpu.memory_space<vmem>>, vector<192x32xbf16>
    %cst = arith.constant dense<0.000000e+00> : vector<4x32xf32>
    %3 = tpu.matmul %1, %2, %cst {dimension_numbers = #tpu.dot_dimension_numbers<[1], [0], [0], [1], [0, 0, 1, 1], [], []>} : vector<4x192xbf16>, vector<192x32xbf16>, vector<4x32xf32> -> vector<4x32xf32>
    %c0_4 = arith.constant 0 : index
    %c0_5 = arith.constant 0 : index
    %4 = vector.load %arg3[%c0_4, %c0_5] : memref<1x32xf32, #tpu.memory_space<vmem>>, vector<1x32xf32>
    %5 = vector.broadcast %4 : vector<1x32xf32> to vector<4x32xf32>
    %6 = arith.addf %3, %5 : vector<4x32xf32>
    %c0_6 = arith.constant 0 : index
    %c0_7 = arith.constant 0 : index
    %c0_8 = arith.constant 0 : index
    %7 = vector.load %arg4[%c0_6, %c0_7, %c0_8] : memref<1x4x32xf32, #tpu.memory_space<vmem>>, vector<1x4x32xf32>
    %8 = vector.shape_cast %7 : vector<1x4x32xf32> to vector<4x32xf32>
    %9 = vector.shape_cast %6 : vector<4x32xf32> to vector<1x4x32xf32>
    tpu.vector_store %arg4[%c0_6, %c0_7, %c0_8], %9 {strides = array<i32>} : memref<1x4x32xf32, #tpu.memory_space<vmem>>, vector<1x4x32xf32>,
    return
  }
  func.func @transform_0(%arg0: i32) -> (i32, i32, i32) {
    %c0_i32 = arith.constant 0 : i32
    %c0_i32_0 = arith.constant 0 : i32
    %c0_i32_1 = arith.constant 0 : i32
    return %arg0, %c0_i32, %c0_i32_0 : i32, i32, i32
  }
  func.func @transform_1(%arg0: i32) -> (i32, i32) {
    %c0_i32 = arith.constant 0 : i32
    %c0_i32_0 = arith.constant 0 : i32
    %c0_i32_1 = arith.constant 0 : i32
    return %c0_i32, %c0_i32_0 : i32, i32
  }
  func.func @transform_2(%arg0: i32) -> (i32, i32) {
    %c0_i32 = arith.constant 0 : i32
    %c0_i32_0 = arith.constant 0 : i32
    %c0_i32_1 = arith.constant 0 : i32
    return %c0_i32, %c0_i32_0 : i32, i32
  }
  func.func @transform_3(%arg0: i32) -> (i32, i32, i32) {
    %c0_i32 = arith.constant 0 : i32
    %c0_i32_0 = arith.constant 0 : i32
    %c0_i32_1 = arith.constant 0 : i32
    return %arg0, %c0_i32, %c0_i32_0 : i32, i32, i32
  }
}

module attributes {stable_mosaic.version = 11 : i64} {
  func.func @_mlp_block_kernel(%arg0: i32, %arg1: memref<1x5x32xf32, #tpu.memory_space<vmem>>, %arg2: memref<1x32xf32, #tpu.memory_space<vmem>>, %arg3: memref<1x32xf32, #tpu.memory_space<vmem>>, %arg4: memref<32x128xbf16, #tpu.memory_space<vmem>>, %arg5: memref<1x128xf32, #tpu.memory_space<vmem>>, %arg6: memref<128x32xbf16, #tpu.memory_space<vmem>>, %arg7: memref<1x32xf32, #tpu.memory_space<vmem>>, %arg8: memref<1x5x32xf32, #tpu.memory_space<vmem>>) attributes {dimension_semantics = [#tpu.dimension_semantics<parallel>], iteration_bounds = array<i64: 2>, scalar_prefetch = 0 : i64, scratch_operands = 0 : i64, tpu.core_type = #tpu.core_type<tc>, window_params = [{transform_indices = @transform_0, window_bounds = array<i64: 1, 5, 32>}, {pipeline_mode = #tpu.pipeline_mode<synchronous>, transform_indices = @transform_1, window_bounds = array<i64: 1, 32>}, {pipeline_mode = #tpu.pipeline_mode<synchronous>, transform_indices = @transform_2, window_bounds = array<i64: 1, 32>}, {pipeline_mode = #tpu.pipeline_mode<synchronous>, transform_indices = @transform_3, window_bounds = array<i64: 32, 128>}, {pipeline_mode = #tpu.pipeline_mode<synchronous>, transform_indices = @transform_4, window_bounds = array<i64: 1, 128>}, {pipeline_mode = #tpu.pipeline_mode<synchronous>, transform_indices = @transform_5, window_bounds = array<i64: 128, 32>}, {pipeline_mode = #tpu.pipeline_mode<synchronous>, transform_indices = @transform_6, window_bounds = array<i64: 1, 32>}, {transform_indices = @transform_7, window_bounds = array<i64: 1, 5, 32>}]} {
    %c0 = arith.constant 0 : index
    %c0_0 = arith.constant 0 : index
    %c0_1 = arith.constant 0 : index
    %0 = vector.load %arg1[%c0, %c0_0, %c0_1] : memref<1x5x32xf32, #tpu.memory_space<vmem>>, vector<1x5x32xf32>
    %1 = vector.shape_cast %0 : vector<1x5x32xf32> to vector<5x32xf32>
    %cst = arith.constant dense<0.000000e+00> : vector<5xf32>
    %2 = vector.multi_reduction <add>, %1, %cst [1] : vector<5x32xf32> to vector<5xf32>
    %3 = vector.shape_cast %2 : vector<5xf32> to vector<5x1xf32>
    %cst_2 = arith.constant 3.200000e+01 : f32
    %4 = vector.broadcast %cst_2 : f32 to vector<5x1xf32>
    %5 = arith.divf %3, %4 : vector<5x1xf32>
    %6 = vector.broadcast %5 : vector<5x1xf32> to vector<5x32xf32>
    %7 = arith.subf %1, %6 : vector<5x32xf32>
    %8 = arith.mulf %7, %7 : vector<5x32xf32>
    %cst_3 = arith.constant dense<0.000000e+00> : vector<5xf32>
    %9 = vector.multi_reduction <add>, %8, %cst_3 [1] : vector<5x32xf32> to vector<5xf32>
    %10 = vector.shape_cast %9 : vector<5xf32> to vector<5x1xf32>
    %cst_4 = arith.constant 3.200000e+01 : f32
    %11 = vector.broadcast %cst_4 : f32 to vector<5x1xf32>
    %12 = arith.divf %10, %11 : vector<5x1xf32>
    %13 = vector.broadcast %5 : vector<5x1xf32> to vector<5x32xf32>
    %14 = arith.subf %1, %13 : vector<5x32xf32>
    %cst_5 = arith.constant 9.99999996E-13 : f32
    %15 = vector.broadcast %cst_5 : f32 to vector<5x1xf32>
    %16 = arith.addf %12, %15 : vector<5x1xf32>
    %17 = math.rsqrt %16 : vector<5x1xf32>
    %18 = vector.broadcast %17 : vector<5x1xf32> to vector<5x32xf32>
    %19 = arith.mulf %14, %18 : vector<5x32xf32>
    %c0_6 = arith.constant 0 : index
    %c0_7 = arith.constant 0 : index
    %20 = vector.load %arg2[%c0_6, %c0_7] : memref<1x32xf32, #tpu.memory_space<vmem>>, vector<1x32xf32>
    %21 = vector.broadcast %20 : vector<1x32xf32> to vector<5x32xf32>
    %22 = arith.mulf %19, %21 : vector<5x32xf32>
    %c0_8 = arith.constant 0 : index
    %c0_9 = arith.constant 0 : index
    %23 = vector.load %arg3[%c0_8, %c0_9] : memref<1x32xf32, #tpu.memory_space<vmem>>, vector<1x32xf32>
    %24 = vector.broadcast %23 : vector<1x32xf32> to vector<5x32xf32>
    %25 = arith.addf %22, %24 : vector<5x32xf32>
    %26 = arith.truncf %25 : vector<5x32xf32> to vector<5x32xbf16>
    %c0_10 = arith.constant 0 : index
    %c0_11 = arith.constant 0 : index
    %27 = vector.load %arg4[%c0_10, %c0_11] : memref<32x128xbf16, #tpu.memory_space<vmem>>, vector<32x128xbf16>
    %cst_12 = arith.constant dense<0.000000e+00> : vector<5x128xf32>
    %28 = tpu.matmul %26, %27, %cst_12 {dimension_numbers = #tpu.dot_dimension_numbers<[1], [0], [0], [1], [0, 0, 1, 1], [], []>} : vector<5x32xbf16>, vector<32x128xbf16>, vector<5x128xf32> -> vector<5x128xf32>
    %c0_13 = arith.constant 0 : index
    %c0_14 = arith.constant 0 : index
    %29 = vector.load %arg5[%c0_13, %c0_14] : memref<1x128xf32, #tpu.memory_space<vmem>>, vector<1x128xf32>
    %30 = vector.broadcast %29 : vector<1x128xf32> to vector<5x128xf32>
    %31 = arith.addf %28, %30 : vector<5x128xf32>
    %32 = arith.mulf %31, %31 : vector<5x128xf32>
    %33 = arith.mulf %31, %32 : vector<5x128xf32>
    %cst_15 = arith.constant 4.471500e-02 : f32
    %34 = vector.broadcast %cst_15 : f32 to vector<5x128xf32>
    %35 = arith.mulf %34, %33 : vector<5x128xf32>
    %36 = arith.addf %31, %35 : vector<5x128xf32>
    %cst_16 = arith.constant 0.797884583 : f32
    %37 = vector.broadcast %cst_16 : f32 to vector<5x128xf32>
    %38 = arith.mulf %37, %36 : vector<5x128xf32>
    %39 = math.tanh %38 : vector<5x128xf32>
    %cst_17 = arith.constant 1.000000e+00 : f32
    %40 = vector.broadcast %cst_17 : f32 to vector<5x128xf32>
    %41 = arith.addf %40, %39 : vector<5x128xf32>
    %cst_18 = arith.constant 5.000000e-01 : f32
    %42 = vector.broadcast %cst_18 : f32 to vector<5x128xf32>
    %43 = arith.mulf %42, %41 : vector<5x128xf32>
    %44 = arith.mulf %31, %43 : vector<5x128xf32>
    %45 = arith.truncf %44 : vector<5x128xf32> to vector<5x128xbf16>
    %c0_19 = arith.constant 0 : index
    %c0_20 = arith.constant 0 : index
    %46 = vector.load %arg6[%c0_19, %c0_20] : memref<128x32xbf16, #tpu.memory_space<vmem>>, vector<128x32xbf16>
    %cst_21 = arith.constant dense<0.000000e+00> : vector<5x32xf32>
    %47 = tpu.matmul %45, %46, %cst_21 {dimension_numbers = #tpu.dot_dimension_numbers<[1], [0], [0], [1], [0, 0, 1, 1], [], []>} : vector<5x128xbf16>, vector<128x32xbf16>, vector<5x32xf32> -> vector<5x32xf32>
    %c0_22 = arith.constant 0 : index
    %c0_23 = arith.constant 0 : index
    %48 = vector.load %arg7[%c0_22, %c0_23] : memref<1x32xf32, #tpu.memory_space<vmem>>, vector<1x32xf32>
    %49 = vector.broadcast %48 : vector<1x32xf32> to vector<5x32xf32>
    %50 = arith.addf %47, %49 : vector<5x32xf32>
    %51 = arith.addf %1, %50 : vector<5x32xf32>
    %c0_24 = arith.constant 0 : index
    %c0_25 = arith.constant 0 : index
    %c0_26 = arith.constant 0 : index
    %52 = vector.load %arg8[%c0_24, %c0_25, %c0_26] : memref<1x5x32xf32, #tpu.memory_space<vmem>>, vector<1x5x32xf32>
    %53 = vector.shape_cast %52 : vector<1x5x32xf32> to vector<5x32xf32>
    %54 = vector.shape_cast %51 : vector<5x32xf32> to vector<1x5x32xf32>
    tpu.vector_store %arg8[%c0_24, %c0_25, %c0_26], %54 {strides = array<i32>} : memref<1x5x32xf32, #tpu.memory_space<vmem>>, vector<1x5x32xf32>,
    return
  }
  func.func @transform_0(%arg0: i32) -> (i32, i32, i32) {
    %c0_i32 = arith.constant 0 : i32
    %c0_i32_0 = arith.constant 0 : i32
    %c0_i32_1 = arith.constant 0 : i32
    return %arg0, %c0_i32, %c0_i32_0 : i32, i32, i32
  }
  func.func @transform_1(%arg0: i32) -> (i32, i32) {
    %c0_i32 = arith.constant 0 : i32
    %c0_i32_0 = arith.constant 0 : i32
    %c0_i32_1 = arith.constant 0 : i32
    return %c0_i32, %c0_i32_0 : i32, i32
  }
  func.func @transform_2(%arg0: i32) -> (i32, i32) {
    %c0_i32 = arith.constant 0 : i32
    %c0_i32_0 = arith.constant 0 : i32
    %c0_i32_1 = arith.constant 0 : i32
    return %c0_i32, %c0_i32_0 : i32, i32
  }
  func.func @transform_3(%arg0: i32) -> (i32, i32) {
    %c0_i32 = arith.constant 0 : i32
    %c0_i32_0 = arith.constant 0 : i32
    %c0_i32_1 = arith.constant 0 : i32
    return %c0_i32, %c0_i32_0 : i32, i32
  }
  func.func @transform_4(%arg0: i32) -> (i32, i32) {
    %c0_i32 = arith.constant 0 : i32
    %c0_i32_0 = arith.constant 0 : i32
    %c0_i32_1 = arith.constant 0 : i32
    return %c0_i32, %c0_i32_0 : i32, i32
  }
  func.func @transform_5(%arg0: i32) -> (i32, i32) {
    %c0_i32 = arith.constant 0 : i32
    %c0_i32_0 = arith.constant 0 : i32
    %c0_i32_1 = arith.constant 0 : i32
    return %c0_i32, %c0_i32_0 : i32, i32
  }
  func.func @transform_6(%arg0: i32) -> (i32, i32) {
    %c0_i32 = arith.constant 0 : i32
    %c0_i32_0 = arith.constant 0 : i32
    %c0_i32_1 = arith.constant 0 : i32
    return %c0_i32, %c0_i32_0 : i32, i32
  }
  func.func @transform_7(%arg0: i32) -> (i32, i32, i32) {
    %c0_i32 = arith.constant 0 : i32
    %c0_i32_0 = arith.constant 0 : i32
    %c0_i32_1 = arith.constant 0 : i32
    return %arg0, %c0_i32, %c0_i32_0 : i32, i32, i32
  }
}

module attributes {stable_mosaic.version = 11 : i64} {
  func.func @_attn_block_kernel(%arg0: i32, %arg1: memref<1x5x32xf32, #tpu.memory_space<vmem>>, %arg2: memref<1x32xf32, #tpu.memory_space<vmem>>, %arg3: memref<1x32xf32, #tpu.memory_space<vmem>>, %arg4: memref<32x96xbf16, #tpu.memory_space<vmem>>, %arg5: memref<1x96xf32, #tpu.memory_space<vmem>>, %arg6: memref<4x8x32xbf16, #tpu.memory_space<vmem>>, %arg7: memref<1x32xf32, #tpu.memory_space<vmem>>, %arg8: memref<1x5x32xf32, #tpu.memory_space<vmem>>) attributes {dimension_semantics = [#tpu.dimension_semantics<parallel>], iteration_bounds = array<i64: 2>, scalar_prefetch = 0 : i64, scratch_operands = 0 : i64, tpu.core_type = #tpu.core_type<tc>, window_params = [{transform_indices = @transform_0, window_bounds = array<i64: 1, 5, 32>}, {pipeline_mode = #tpu.pipeline_mode<synchronous>, transform_indices = @transform_1, window_bounds = array<i64: 1, 32>}, {pipeline_mode = #tpu.pipeline_mode<synchronous>, transform_indices = @transform_2, window_bounds = array<i64: 1, 32>}, {pipeline_mode = #tpu.pipeline_mode<synchronous>, transform_indices = @transform_3, window_bounds = array<i64: 32, 96>}, {pipeline_mode = #tpu.pipeline_mode<synchronous>, transform_indices = @transform_4, window_bounds = array<i64: 1, 96>}, {pipeline_mode = #tpu.pipeline_mode<synchronous>, transform_indices = @transform_5, window_bounds = array<i64: 4, 8, 32>}, {pipeline_mode = #tpu.pipeline_mode<synchronous>, transform_indices = @transform_6, window_bounds = array<i64: 1, 32>}, {transform_indices = @transform_7, window_bounds = array<i64: 1, 5, 32>}]} {
    %c0 = arith.constant 0 : index
    %c0_0 = arith.constant 0 : index
    %c0_1 = arith.constant 0 : index
    %0 = vector.load %arg1[%c0, %c0_0, %c0_1] : memref<1x5x32xf32, #tpu.memory_space<vmem>>, vector<1x5x32xf32>
    %1 = vector.shape_cast %0 : vector<1x5x32xf32> to vector<5x32xf32>
    %cst = arith.constant dense<0.000000e+00> : vector<5xf32>
    %2 = vector.multi_reduction <add>, %1, %cst [1] : vector<5x32xf32> to vector<5xf32>
    %3 = vector.shape_cast %2 : vector<5xf32> to vector<5x1xf32>
    %cst_2 = arith.constant 3.200000e+01 : f32
    %4 = vector.broadcast %cst_2 : f32 to vector<5x1xf32>
    %5 = arith.divf %3, %4 : vector<5x1xf32>
    %6 = vector.broadcast %5 : vector<5x1xf32> to vector<5x32xf32>
    %7 = arith.subf %1, %6 : vector<5x32xf32>
    %8 = arith.mulf %7, %7 : vector<5x32xf32>
    %cst_3 = arith.constant dense<0.000000e+00> : vector<5xf32>
    %9 = vector.multi_reduction <add>, %8, %cst_3 [1] : vector<5x32xf32> to vector<5xf32>
    %10 = vector.shape_cast %9 : vector<5xf32> to vector<5x1xf32>
    %cst_4 = arith.constant 3.200000e+01 : f32
    %11 = vector.broadcast %cst_4 : f32 to vector<5x1xf32>
    %12 = arith.divf %10, %11 : vector<5x1xf32>
    %13 = vector.broadcast %5 : vector<5x1xf32> to vector<5x32xf32>
    %14 = arith.subf %1, %13 : vector<5x32xf32>
    %cst_5 = arith.constant 9.99999996E-13 : f32
    %15 = vector.broadcast %cst_5 : f32 to vector<5x1xf32>
    %16 = arith.addf %12, %15 : vector<5x1xf32>
    %17 = math.rsqrt %16 : vector<5x1xf32>
    %18 = vector.broadcast %17 : vector<5x1xf32> to vector<5x32xf32>
    %19 = arith.mulf %14, %18 : vector<5x32xf32>
    %c0_6 = arith.constant 0 : index
    %c0_7 = arith.constant 0 : index
    %20 = vector.load %arg2[%c0_6, %c0_7] : memref<1x32xf32, #tpu.memory_space<vmem>>, vector<1x32xf32>
    %21 = vector.broadcast %20 : vector<1x32xf32> to vector<5x32xf32>
    %22 = arith.mulf %19, %21 : vector<5x32xf32>
    %c0_8 = arith.constant 0 : index
    %c0_9 = arith.constant 0 : index
    %23 = vector.load %arg3[%c0_8, %c0_9] : memref<1x32xf32, #tpu.memory_space<vmem>>, vector<1x32xf32>
    %24 = vector.broadcast %23 : vector<1x32xf32> to vector<5x32xf32>
    %25 = arith.addf %22, %24 : vector<5x32xf32>
    %26 = arith.truncf %25 : vector<5x32xf32> to vector<5x32xbf16>
    %c0_10 = arith.constant 0 : index
    %c0_11 = arith.constant 0 : index
    %27 = vector.load %arg4[%c0_10, %c0_11] : memref<32x96xbf16, #tpu.memory_space<vmem>>, vector<32x96xbf16>
    %cst_12 = arith.constant dense<0.000000e+00> : vector<5x96xf32>
    %28 = tpu.matmul %26, %27, %cst_12 {dimension_numbers = #tpu.dot_dimension_numbers<[1], [0], [0], [1], [0, 0, 1, 1], [], []>} : vector<5x32xbf16>, vector<32x96xbf16>, vector<5x96xf32> -> vector<5x96xf32>
    %c0_13 = arith.constant 0 : index
    %c0_14 = arith.constant 0 : index
    %29 = vector.load %arg5[%c0_13, %c0_14] : memref<1x96xf32, #tpu.memory_space<vmem>>, vector<1x96xf32>
    %30 = vector.broadcast %29 : vector<1x96xf32> to vector<5x96xf32>
    %31 = arith.addf %28, %30 : vector<5x96xf32>
    %32 = vector.extract_strided_slice %31 {offsets = [0, 0], sizes = [5, 32], strides = [1, 1]} : vector<5x96xf32> to vector<5x32xf32>
    %33 = vector.shape_cast %32 : vector<5x32xf32> to vector<5x4x8xf32>
    %34 = tpu.transpose %33, [1, 0, 2] : vector<5x4x8xf32> -> vector<4x5x8xf32>
    %35 = arith.truncf %34 : vector<4x5x8xf32> to vector<4x5x8xbf16>
    %36 = vector.extract_strided_slice %31 {offsets = [0, 32], sizes = [5, 32], strides = [1, 1]} : vector<5x96xf32> to vector<5x32xf32>
    %37 = vector.shape_cast %36 : vector<5x32xf32> to vector<5x4x8xf32>
    %38 = tpu.transpose %37, [1, 0, 2] : vector<5x4x8xf32> -> vector<4x5x8xf32>
    %39 = arith.truncf %38 : vector<4x5x8xf32> to vector<4x5x8xbf16>
    %40 = vector.extract_strided_slice %31 {offsets = [0, 64], sizes = [5, 32], strides = [1, 1]} : vector<5x96xf32> to vector<5x32xf32>
    %41 = vector.shape_cast %40 : vector<5x32xf32> to vector<5x4x8xf32>
    %42 = tpu.transpose %41, [1, 0, 2] : vector<5x4x8xf32> -> vector<4x5x8xf32>
    %43 = arith.truncf %42 : vector<4x5x8xf32> to vector<4x5x8xbf16>
    %cst_15 = arith.constant dense<0.000000e+00> : vector<4x5x5xf32>
    %44 = tpu.matmul %35, %39, %cst_15 {dimension_numbers = #tpu.dot_dimension_numbers<[2], [2], [1], [1], [0, 0, 0, 1, 1, 1], [0], [0]>} : vector<4x5x8xbf16>, vector<4x5x8xbf16>, vector<4x5x5xf32> -> vector<4x5x5xf32>
    %cst_16 = arith.constant 0.353553385 : f32
    %45 = vector.broadcast %cst_16 : f32 to vector<4x5x5xf32>
    %46 = arith.mulf %44, %45 : vector<4x5x5xf32>
    %cst_17 = arith.constant dense<0xFF800000> : vector<4x5xf32>
    %47 = vector.multi_reduction <maximumf>, %46, %cst_17 [2] : vector<4x5x5xf32> to vector<4x5xf32>
    %48 = vector.shape_cast %47 : vector<4x5xf32> to vector<4x5x1xf32>
    %49 = vector.broadcast %48 : vector<4x5x1xf32> to vector<4x5x5xf32>
    %50 = arith.subf %46, %49 : vector<4x5x5xf32>
    %51 = math.exp %50 : vector<4x5x5xf32>
    %cst_18 = arith.constant dense<0.000000e+00> : vector<4x5xf32>
    %52 = vector.multi_reduction <add>, %51, %cst_18 [2] : vector<4x5x5xf32> to vector<4x5xf32>
    %53 = vector.shape_cast %52 : vector<4x5xf32> to vector<4x5x1xf32>
    %54 = tpu.reciprocal %53 {approx = true} : vector<4x5x1xf32> -> vector<4x5x1xf32>
    %55 = vector.broadcast %54 : vector<4x5x1xf32> to vector<4x5x5xf32>
    %56 = arith.mulf %51, %55 : vector<4x5x5xf32>
    %57 = arith.truncf %56 : vector<4x5x5xf32> to vector<4x5x5xbf16>
    %cst_19 = arith.constant dense<0.000000e+00> : vector<4x5x8xf32>
    %58 = tpu.matmul %57, %43, %cst_19 {dimension_numbers = #tpu.dot_dimension_numbers<[2], [1], [1], [2], [0, 0, 0, 1, 1, 2], [0], [0]>} : vector<4x5x5xbf16>, vector<4x5x8xbf16>, vector<4x5x8xf32> -> vector<4x5x8xf32>
    %59 = arith.truncf %58 : vector<4x5x8xf32> to vector<4x5x8xbf16>
    %c0_20 = arith.constant 0 : index
    %c0_21 = arith.constant 0 : index
    %c0_22 = arith.constant 0 : index
    %60 = vector.load %arg6[%c0_20, %c0_21, %c0_22] : memref<4x8x32xbf16, #tpu.memory_space<vmem>>, vector<4x8x32xbf16>
    %cst_23 = arith.constant dense<0.000000e+00> : vector<4x5x32xf32>
    %61 = tpu.matmul %59, %60, %cst_23 {dimension_numbers = #tpu.dot_dimension_numbers<[2], [1], [1], [2], [0, 0, 0, 1, 1, 2], [0], [0]>} : vector<4x5x8xbf16>, vector<4x8x32xbf16>, vector<4x5x32xf32> -> vector<4x5x32xf32>
    %cst_24 = arith.constant dense<0.000000e+00> : vector<5x32xf32>
    %62 = vector.multi_reduction <add>, %61, %cst_24 [0] : vector<4x5x32xf32> to vector<5x32xf32>
    %c0_25 = arith.constant 0 : index
    %c0_26 = arith.constant 0 : index
    %63 = vector.load %arg7[%c0_25, %c0_26] : memref<1x32xf32, #tpu.memory_space<vmem>>, vector<1x32xf32>
    %64 = vector.broadcast %63 : vector<1x32xf32> to vector<5x32xf32>
    %65 = arith.addf %62, %64 : vector<5x32xf32>
    %66 = arith.addf %1, %65 : vector<5x32xf32>
    %c0_27 = arith.constant 0 : index
    %c0_28 = arith.constant 0 : index
    %c0_29 = arith.constant 0 : index
    %67 = vector.load %arg8[%c0_27, %c0_28, %c0_29] : memref<1x5x32xf32, #tpu.memory_space<vmem>>, vector<1x5x32xf32>
    %68 = vector.shape_cast %67 : vector<1x5x32xf32> to vector<5x32xf32>
    %69 = vector.shape_cast %66 : vector<5x32xf32> to vector<1x5x32xf32>
    tpu.vector_store %arg8[%c0_27, %c0_28, %c0_29], %69 {strides = array<i32>} : memref<1x5x32xf32, #tpu.memory_space<vmem>>, vector<1x5x32xf32>,
    return
  }
  func.func @transform_0(%arg0: i32) -> (i32, i32, i32) {
    %c0_i32 = arith.constant 0 : i32
    %c0_i32_0 = arith.constant 0 : i32
    %c0_i32_1 = arith.constant 0 : i32
    return %arg0, %c0_i32, %c0_i32_0 : i32, i32, i32
  }
  func.func @transform_1(%arg0: i32) -> (i32, i32) {
    %c0_i32 = arith.constant 0 : i32
    %c0_i32_0 = arith.constant 0 : i32
    %c0_i32_1 = arith.constant 0 : i32
    return %c0_i32, %c0_i32_0 : i32, i32
  }
  func.func @transform_2(%arg0: i32) -> (i32, i32) {
    %c0_i32 = arith.constant 0 : i32
    %c0_i32_0 = arith.constant 0 : i32
    %c0_i32_1 = arith.constant 0 : i32
    return %c0_i32, %c0_i32_0 : i32, i32
  }
  func.func @transform_3(%arg0: i32) -> (i32, i32) {
    %c0_i32 = arith.constant 0 : i32
    %c0_i32_0 = arith.constant 0 : i32
    %c0_i32_1 = arith.constant 0 : i32
    return %c0_i32, %c0_i32_0 : i32, i32
  }
  func.func @transform_4(%arg0: i32) -> (i32, i32) {
    %c0_i32 = arith.constant 0 : i32
    %c0_i32_0 = arith.constant 0 : i32
    %c0_i32_1 = arith.constant 0 : i32
    return %c0_i32, %c0_i32_0 : i32, i32
  }
  func.func @transform_5(%arg0: i32) -> (i32, i32, i32) {
    %c0_i32 = arith.constant 0 : i32
    %c0_i32_0 = arith.constant 0 : i32
    %c0_i32_1 = arith.constant 0 : i32
    %c0_i32_2 = arith.constant 0 : i32
    return %c0_i32, %c0_i32_0, %c0_i32_1 : i32, i32, i32
  }
  func.func @transform_6(%arg0: i32) -> (i32, i32) {
    %c0_i32 = arith.constant 0 : i32
    %c0_i32_0 = arith.constant 0 : i32
    %c0_i32_1 = arith.constant 0 : i32
    return %c0_i32, %c0_i32_0 : i32, i32
  }
  func.func @transform_7(%arg0: i32) -> (i32, i32, i32) {
    %c0_i32 = arith.constant 0 : i32
    %c0_i32_0 = arith.constant 0 : i32
    %c0_i32_1 = arith.constant 0 : i32
    return %arg0, %c0_i32, %c0_i32_0 : i32, i32, i32
  }
}

module attributes {stable_mosaic.version = 11 : i64} {
  func.func @_head_kernel(%arg0: memref<2x32xf32, #tpu.memory_space<vmem>>, %arg1: memref<1x32xf32, #tpu.memory_space<vmem>>, %arg2: memref<1x32xf32, #tpu.memory_space<vmem>>, %arg3: memref<32x32xbf16, #tpu.memory_space<vmem>>, %arg4: memref<1x32xf32, #tpu.memory_space<vmem>>, %arg5: memref<32x512xbf16, #tpu.memory_space<vmem>>, %arg6: memref<1x512xf32, #tpu.memory_space<vmem>>, %arg7: memref<1x512xf32, #tpu.memory_space<vmem>>, %arg8: memref<1x512xf32, #tpu.memory_space<vmem>>, %arg9: memref<1x512xf32, #tpu.memory_space<vmem>>, %arg10: memref<1x512xf32, #tpu.memory_space<vmem>>, %arg11: memref<512x2xbf16, #tpu.memory_space<vmem>>, %arg12: memref<1x2xf32, #tpu.memory_space<vmem>>, %arg13: memref<2x2xf32, #tpu.memory_space<vmem>>) attributes {dimension_semantics = [], scalar_prefetch = 0 : i64, scratch_operands = 0 : i64, tpu.core_type = #tpu.core_type<tc>} {
    %c0 = arith.constant 0 : index
    %c0_0 = arith.constant 0 : index
    %0 = vector.load %arg0[%c0, %c0_0] : memref<2x32xf32, #tpu.memory_space<vmem>>, vector<2x32xf32>
    %cst = arith.constant dense<0.000000e+00> : vector<2xf32>
    %1 = vector.multi_reduction <add>, %0, %cst [1] : vector<2x32xf32> to vector<2xf32>
    %2 = vector.shape_cast %1 : vector<2xf32> to vector<2x1xf32>
    %cst_1 = arith.constant 3.200000e+01 : f32
    %3 = vector.broadcast %cst_1 : f32 to vector<2x1xf32>
    %4 = arith.divf %2, %3 : vector<2x1xf32>
    %5 = vector.broadcast %4 : vector<2x1xf32> to vector<2x32xf32>
    %6 = arith.subf %0, %5 : vector<2x32xf32>
    %7 = arith.mulf %6, %6 : vector<2x32xf32>
    %cst_2 = arith.constant dense<0.000000e+00> : vector<2xf32>
    %8 = vector.multi_reduction <add>, %7, %cst_2 [1] : vector<2x32xf32> to vector<2xf32>
    %9 = vector.shape_cast %8 : vector<2xf32> to vector<2x1xf32>
    %cst_3 = arith.constant 3.200000e+01 : f32
    %10 = vector.broadcast %cst_3 : f32 to vector<2x1xf32>
    %11 = arith.divf %9, %10 : vector<2x1xf32>
    %12 = vector.broadcast %4 : vector<2x1xf32> to vector<2x32xf32>
    %13 = arith.subf %0, %12 : vector<2x32xf32>
    %cst_4 = arith.constant 9.99999996E-13 : f32
    %14 = vector.broadcast %cst_4 : f32 to vector<2x1xf32>
    %15 = arith.addf %11, %14 : vector<2x1xf32>
    %16 = math.rsqrt %15 : vector<2x1xf32>
    %17 = vector.broadcast %16 : vector<2x1xf32> to vector<2x32xf32>
    %18 = arith.mulf %13, %17 : vector<2x32xf32>
    %c0_5 = arith.constant 0 : index
    %c0_6 = arith.constant 0 : index
    %19 = vector.load %arg1[%c0_5, %c0_6] : memref<1x32xf32, #tpu.memory_space<vmem>>, vector<1x32xf32>
    %20 = vector.broadcast %19 : vector<1x32xf32> to vector<2x32xf32>
    %21 = arith.mulf %18, %20 : vector<2x32xf32>
    %c0_7 = arith.constant 0 : index
    %c0_8 = arith.constant 0 : index
    %22 = vector.load %arg2[%c0_7, %c0_8] : memref<1x32xf32, #tpu.memory_space<vmem>>, vector<1x32xf32>
    %23 = vector.broadcast %22 : vector<1x32xf32> to vector<2x32xf32>
    %24 = arith.addf %21, %23 : vector<2x32xf32>
    %25 = arith.truncf %24 : vector<2x32xf32> to vector<2x32xbf16>
    %c0_9 = arith.constant 0 : index
    %c0_10 = arith.constant 0 : index
    %26 = vector.load %arg3[%c0_9, %c0_10] : memref<32x32xbf16, #tpu.memory_space<vmem>>, vector<32x32xbf16>
    %cst_11 = arith.constant dense<0.000000e+00> : vector<2x32xf32>
    %27 = tpu.matmul %25, %26, %cst_11 {dimension_numbers = #tpu.dot_dimension_numbers<[1], [0], [0], [1], [0, 0, 1, 1], [], []>} : vector<2x32xbf16>, vector<32x32xbf16>, vector<2x32xf32> -> vector<2x32xf32>
    %c0_12 = arith.constant 0 : index
    %c0_13 = arith.constant 0 : index
    %28 = vector.load %arg4[%c0_12, %c0_13] : memref<1x32xf32, #tpu.memory_space<vmem>>, vector<1x32xf32>
    %29 = vector.broadcast %28 : vector<1x32xf32> to vector<2x32xf32>
    %30 = arith.addf %27, %29 : vector<2x32xf32>
    %31 = math.tanh %30 : vector<2x32xf32>
    %32 = arith.truncf %31 : vector<2x32xf32> to vector<2x32xbf16>
    %c0_14 = arith.constant 0 : index
    %c0_15 = arith.constant 0 : index
    %33 = vector.load %arg5[%c0_14, %c0_15] : memref<32x512xbf16, #tpu.memory_space<vmem>>, vector<32x512xbf16>
    %cst_16 = arith.constant dense<0.000000e+00> : vector<2x512xf32>
    %34 = tpu.matmul %32, %33, %cst_16 {dimension_numbers = #tpu.dot_dimension_numbers<[1], [0], [0], [1], [0, 0, 1, 1], [], []>} : vector<2x32xbf16>, vector<32x512xbf16>, vector<2x512xf32> -> vector<2x512xf32>
    %c0_17 = arith.constant 0 : index
    %c0_18 = arith.constant 0 : index
    %35 = vector.load %arg6[%c0_17, %c0_18] : memref<1x512xf32, #tpu.memory_space<vmem>>, vector<1x512xf32>
    %36 = vector.broadcast %35 : vector<1x512xf32> to vector<2x512xf32>
    %37 = arith.addf %34, %36 : vector<2x512xf32>
    %cst_19 = arith.constant 0.000000e+00 : f32
    %38 = vector.broadcast %cst_19 : f32 to vector<2x512xf32>
    %39 = arith.maximumf %37, %38 : vector<2x512xf32>
    %c0_20 = arith.constant 0 : index
    %c0_21 = arith.constant 0 : index
    %40 = vector.load %arg9[%c0_20, %c0_21] : memref<1x512xf32, #tpu.memory_space<vmem>>, vector<1x512xf32>
    %41 = vector.broadcast %40 : vector<1x512xf32> to vector<2x512xf32>
    %42 = arith.subf %39, %41 : vector<2x512xf32>
    %c0_22 = arith.constant 0 : index
    %c0_23 = arith.constant 0 : index
    %43 = vector.load %arg10[%c0_22, %c0_23] : memref<1x512xf32, #tpu.memory_space<vmem>>, vector<1x512xf32>
    %cst_24 = arith.constant 9.99999974E-6 : f32
    %44 = vector.broadcast %cst_24 : f32 to vector<1x512xf32>
    %45 = arith.addf %43, %44 : vector<1x512xf32>
    %46 = math.rsqrt %45 : vector<1x512xf32>
    %47 = vector.broadcast %46 : vector<1x512xf32> to vector<2x512xf32>
    %48 = arith.mulf %42, %47 : vector<2x512xf32>
    %c0_25 = arith.constant 0 : index
    %c0_26 = arith.constant 0 : index
    %49 = vector.load %arg7[%c0_25, %c0_26] : memref<1x512xf32, #tpu.memory_space<vmem>>, vector<1x512xf32>
    %50 = vector.broadcast %49 : vector<1x512xf32> to vector<2x512xf32>
    %51 = arith.mulf %48, %50 : vector<2x512xf32>
    %c0_27 = arith.constant 0 : index
    %c0_28 = arith.constant 0 : index
    %52 = vector.load %arg8[%c0_27, %c0_28] : memref<1x512xf32, #tpu.memory_space<vmem>>, vector<1x512xf32>
    %53 = vector.broadcast %52 : vector<1x512xf32> to vector<2x512xf32>
    %54 = arith.addf %51, %53 : vector<2x512xf32>
    %55 = arith.truncf %54 : vector<2x512xf32> to vector<2x512xbf16>
    %c0_29 = arith.constant 0 : index
    %c0_30 = arith.constant 0 : index
    %56 = vector.load %arg11[%c0_29, %c0_30] : memref<512x2xbf16, #tpu.memory_space<vmem>>, vector<512x2xbf16>
    %cst_31 = arith.constant dense<0.000000e+00> : vector<2x2xf32>
    %57 = tpu.matmul %55, %56, %cst_31 {dimension_numbers = #tpu.dot_dimension_numbers<[1], [0], [0], [1], [0, 0, 1, 1], [], []>} : vector<2x512xbf16>, vector<512x2xbf16>, vector<2x2xf32> -> vector<2x2xf32>
    %c0_32 = arith.constant 0 : index
    %c0_33 = arith.constant 0 : index
    %58 = vector.load %arg12[%c0_32, %c0_33] : memref<1x2xf32, #tpu.memory_space<vmem>>, vector<1x2xf32>
    %59 = vector.broadcast %58 : vector<1x2xf32> to vector<2x2xf32>
    %60 = arith.addf %57, %59 : vector<2x2xf32>
    %c0_34 = arith.constant 0 : index
    %c0_35 = arith.constant 0 : index
    %61 = vector.load %arg13[%c0_34, %c0_35] : memref<2x2xf32, #tpu.memory_space<vmem>>, vector<2x2xf32>
    tpu.vector_store %arg13[%c0_34, %c0_35], %60 {strides = array<i32>} : memref<2x2xf32, #tpu.memory_space<vmem>>, vector<2x2xf32>,
    return
  }
}

</mosaic_0001>

<bundles_post_ra>
// kernel: deepfake_vit_forward.6
= control target key start
LH: loop header
LB: loop body
LE: loop exit
PB: predicated region body
PF: predicated region fallthrough
CT: control target
= control target key end

     0   :  { %s459_s12 = smov 0   ;;  %s522_s0 = inlined_call_operand.vmem [shape: bf16[2,4,192], index: 0, kind: input, shape index: {}]   ;;  %s523_s1 = inlined_call_operand.vmem [shape: bf16[192,32], index: 1, kind: input, shape index: {}]   ;;  %s524_s2 = inlined_call_operand.vmem [shape: f32[1,32], index: 2, kind: input, shape index: {}]   ;;  %s525_s3 = inlined_call_operand.vmem [shape: f32[2,4,32], index: 3, kind: output, shape index: {}]  }
   0x1 LB: > { %s383_s13 = sadd.s32 4294967295, %s436_s12   ;;  %p387_p0 = scmp.ge.s32.totalorder %s436_s12, 1  ;;  %s436_s12 = sphi %s459_s12, %s13_s12  }
   0x2   : > { %p137_p1 = scmp.lt.s32.totalorder %s436_s12, 3 }
   0x4   : > { %p138_p2 = pnand %p387_p0, %p137_p1 }
   0x5   : > { %v418_v0 = vld [vmem:[%s523_s1] sm:$0xff] (!%p138_p2)   ;;  %v438_v1 = vmov (!%p138_p2), 0   ;;  %p160_p3 = scmp.lt.s32.totalorder (!%p138_p2), %s383_s13, 1  ;;  %v419_v2 = vld [vmem:[%s523_s1 + $0x8] sm:$0xff] (!%p138_p2)   ;;  %v420_v3 = vld [vmem:[%s523_s1 + $0x10] sm:$0xff] (!%p138_p2)   ;;  %vm284_vm0 = vcmask (!%p138_p2), 523264  }
   0x6   : > { %141 = sbr.rel (%p138_p2) target bundleno = 269 (0x10d), region = 32  ;;  %288 = vmatprep.subr.bf16.mxu0 (!%p138_p2), %v438_v1  ;;  %v421_v4 = vld [vmem:[%s523_s1 + $0x18] sm:$0xff] (!%p138_p2)   ;;  %v422_v7 = vld [vmem:[%s523_s1 + $0x20] sm:$0xff] (!%p138_p2)   ;;  %v423_v8 = vld [vmem:[%s523_s1 + $0x28] sm:$0xff] (!%p138_p2)   ;;  %vm328_vm1 = vcmask (!%p138_p2), 257024  }
   0x7   : > { %289 = vmatpush1.bf16.msra.mxu0 (!%p138_p2), %v418_v0  ;;  %v424_v9 = vld [vmem:[%s523_s1 + $0x30] sm:$0xff] (!%p138_p2)   ;;  %v425_v10 = vld [vmem:[%s523_s1 + $0x38] sm:$0xff] (!%p138_p2)   ;;  %v426_v11 = vld [vmem:[%s523_s1 + $0x40] sm:$0xff] (!%p138_p2)  }
   0x8   : > { %290 = vmatprep.subr.bf16.mxu0 (!%p138_p2), %v438_v1  ;;  %v427_v12 = vld [vmem:[%s523_s1 + $0x48] sm:$0xff] (!%p138_p2)   ;;  %v428_v13 = vld [vmem:[%s523_s1 + $0x50] sm:$0xff] (!%p138_p2)   ;;  %v429_v14 = vld [vmem:[%s523_s1 + $0x58] sm:$0xff] (!%p138_p2)  }
   0x9   : > { %v391_v15 = vld [vmem:[%s524_s2] ss:$0 sm:$0xff] (!%p138_p2) }
   0xb   : > { %291 = vmatpush1.bf16.msra.mxu0 (!%p138_p2), %v419_v2 }
   0xc   : > { %292 = vmatprep.subr.bf16.mxu0 (!%p138_p2), %v438_v1 }
   0xd   : > { %s527_s13 = smov (!%p160_p3, %s383_s13), 1 }
   0xe   : > { %s408_s20 = sshll.u32 %s527_s13, 2 }
   0xf   : > { %s164_s23 = scalar_lea.vmem %s522_s0, %s408_s20  ;;  %293 = vmatpush1.bf16.msra.mxu0 %v420_v3  ;;  %s168_s22 = scalar_lea.vmem %s525_s3, %s408_s20 }
  0x10   : > { %294 = vmatprep.subr.bf16.mxu0 %v438_v1  ;;  %v392_v5 = vld.sshfl [vmem:[%s164_s23] sm:$0x33 pattern:$0x76325410] }
  0x11   : > { %v210_v6 = vcombine.high %v392_v5, %v392_v5 }
  0x13   : > { %295 = vmatpush1.bf16.msra.mxu0 %v421_v4  ;;  %405 = vmatprep.mubr.msk.bf16.mxu0 %vm284_vm0, %v210_v6 }
  0x14   : > { %296 = vmatprep.subr.bf16.mxu0 %v438_v1 }
  0x17   : > { %297 = vmatpush1.bf16.msra.mxu0 %v422_v7 }
  0x18   : > { %298 = vmatprep.subr.bf16.mxu0 %v438_v1 }
  0x1b   : > { %299 = vmatpush1.bf16.msra.mxu0 %v423_v8 }
  0x1c   : > { %300 = vmatprep.subr.bf16.mxu0 %v438_v1 }
  0x1f   : > { %301 = vmatpush1.bf16.msra.mxu0 %v424_v9 }
  0x20   : > { %302 = vmatprep.subr.bf16.mxu0 %v438_v1 }
  0x23   : > { %303 = vmatpush1.bf16.msra.mxu0 %v425_v10 }
  0x24   : > { %304 = vmatprep.subr.bf16.mxu0 %v438_v1 }
  0x27   : > { %305 = vmatpush1.bf16.msra.mxu0 %v426_v11 }
  0x28   : > { %306 = vmatprep.subr.bf16.mxu0 %v438_v1 }
  0x2b   : > { %307 = vmatpush1.bf16.msra.mxu0 %v427_v12 }
  0x2c   : > { %308 = vmatprep.subr.bf16.mxu0 %v438_v1 }
  0x2f   : > { %309 = vmatpush1.bf16.msra.mxu0 %v428_v13 }
  0x30   : > { %310 = vmatprep.subr.bf16.mxu0 %v438_v1 }
  0x33   : > { %311 = vmatpush1.bf16.msra.mxu0 %v429_v14 }
  0x36   : > { %321 = vmatmul.mubr.bf16.vlgmr.msra.gmra.mrb[0].mxu0 %v392_v5 }
 0x109   : > { %v322_v16 = vpop.f32.mrb[0].mxu0 }
 0x10a   : > { %v323_v17 = vadd.f32 %v391_v15, %v322_v16  ;;  %v324_v18 = vpop.f32.mrb[1].mxu0 }
 0x10b   : > { %v325_v19 = vpop.f32.mrb[2].mxu0 }
 0x10c   : > { %329 = vst.msk [vmem:[%s168_s22] sm:$0xf] %vm328_vm1, %v323_v17  ;;  %v326_v20 = vpop.f32.mrb[3].mxu0 }
 0x10d PF: > { %s13_s12 = sadd.s32 1, %s436_s12  }
 0x10e   : > { %p10_p4 = scmp.ge.s32.totalorder %s13_s12, 4  }
 0x110   :  { %12 = sbr.rel (!%p10_p4) target bundleno = 1 (0x1), region = 62 }

// kernel: deepfake_vit_forward.8
= control target key start
LH: loop header
LB: loop body
LE: loop exit
PB: predicated region body
PF: predicated region fallthrough
CT: control target
= control target key end

     0   :  { %12 = vsyncpa [#allocation3], 0  ;;  %s1605_s0 = inlined_call_operand.hbm [shape: f32[2,5,32], index: 0, kind: input, shape index: {}, may-alias: {0,7}]   ;;  %s1606_s1 = inlined_call_operand.hbm [shape: f32[1,32], index: 1, kind: input, shape index: {}]   ;;  %s1607_s2 = inlined_call_operand.hbm [shape: f32[1,32], index: 2, kind: input, shape index: {}]   ;;  %s1608_s3 = inlined_call_operand.hbm [shape: bf16[32,128], index: 3, kind: input, shape index: {}]   ;;  %s1609_s4 = inlined_call_operand.hbm [shape: f32[1,128], index: 4, kind: input, shape index: {}]   ;;  %s1610_s5 = inlined_call_operand.hbm [shape: bf16[128,32], index: 5, kind: input, shape index: {}]   ;;  %s1611_s6 = inlined_call_operand.hbm [shape: f32[1,32], index: 6, kind: input, shape index: {}]   ;;  %s1612_s7 = inlined_call_operand.hbm [shape: f32[2,5,32], index: 7, kind: output, shape index: {}, may-alias: {0,7}]  }
   0x1   :  { %14 = vsyncpa [#allocation3 + $0x1], 0 }
   0x2   :  { %15 = vsyncpa [#allocation6], 0 }
   0x3   :  { %16 = vsyncpa [#allocation9], 0 }
   0x4   :  { %17 = vsyncpa [#allocation12], 0 }
   0x5   :  { %18 = vsyncpa [#allocation4], 0 }
   0x6   :  { %20 = vsyncpa [#allocation4 + $0x1], 0  ;;  %s1272_s24 = smov 0   ;;  %s1274_s25 = smov 0  }
   0x7   :  { %s1276_s26 = smov 0   ;;  %s1278_s27 = smov 0  }
   0x8 LB: > { %s1220_s28 = smov [#allocation5]   ;;  %s1293_s30 = sadd.s32 4294967295, %s1218_s27   ;;  %s1218_s27 = sphi %s1278_s27, %s1638_s27   ;;  %s1214_s26 = sphi %s1276_s26, %s1637_s26   ;;  %s1210_s25 = sphi %s1274_s25, %s1636_s25   ;;  %s1206_s24 = sphi %s1272_s24, %s1635_s24  }
   0x9   : > { %s222_s29 = sshll.u32 %s1220_s28, 4  ;;  %p739_p0 = scmp.ge.s32.totalorder %s1218_s27, 1  ;;  %s1298_s29 = int_to_ptr.vmem [resolvable:$true] %s222_s29 }
   0xa   : > { %p1613_p1 = scmp.eq.s32.totalorder %s1293_s30, 0  ;;  %p209_p2 = scmp.lt.s32.totalorder %s1218_s27, 3 }
   0xb   : > { %s1221_s9 = smov [#allocation8]   ;;  %s1222_s12 = smov [#allocation11]  }
   0xc   : > { %p1300_p3 = pnand %p739_p0, %p209_p2  ;;  %s243_s10 = sshll.u32 %s1221_s9, 4  ;;  %s1307_s10 = int_to_ptr.vmem [resolvable:$true] %s243_s10 }
   0xd   : > { %s267_s13 = sshll.u32 %s1222_s12, 4  ;;  %s942_s16 = scalar_lea.hbm %s1606_s1, 16  ;;  %s1315_s13 = int_to_ptr.vmem [resolvable:$true] %s267_s13 }
   0xe   : > { %s1616_s8 = scalar_select %p1300_p3, 1, 0 }
   0xf   : > { %p845_p5 = pneg %p1300_p3  ;;  %p943_p7 = scmp.ne.s32.totalorder %s1606_s1, %s942_s16 }
  0x10   : > { %p949_p11 = scmp.lt.u32.totalorder %s942_s16, %s1606_s1 }
  0x11   : > { %p1311_p6 = pnand %p845_p5, %p1613_p1 }
  0x13   : > { %p1325_p8 = pneg %p1311_p6 }
  0x15   : > { %p945_p9 = pnand %p1325_p8, %p943_p7 }
  0x17   : > { %p946_p10 = pneg %p945_p9 }
  0x19   : > { %p951_p12 = pnand %p949_p11, %p946_p10 }
  0x1b   : > { %954 = shalt.err (!%p951_p12)
}
  0x1c   : > { %s955_s22 = scalar_lea.vmem %s1298_s29, 16  ;;  %s962_s23 = scalar_lea.vmem %s1298_s29, 32 }
  0x1d   : > { %p956_p13 = scmp.ne.s32.totalorder %s1298_s29, %s955_s22  ;;  %p963_p5 = scmp.lt.s32.totalorder %s1298_s29, %s1298_s29 }
  0x1e   : > { %p964_p7 = scmp.lt.s32.totalorder %s962_s23, %s955_s22 }
  0x1f   : > { %p958_p0 = pnand %p956_p13, %p1325_p8 }
  0x20   : > { %p965_p9 = por %p964_p7, %p963_p5 }
  0x21   : > { %p959_p2 = pneg %p958_p0 }
  0x23   : > { %p966_p4 = pnand %p965_p9, %p959_p2 }
  0x25   : > { %969 = shalt.err (!%p966_p4)
}
  0x26   : > { %848 = dma.hbm_to_vmem [thread:$0]  (!%p1311_p6), %s1606_s1, 16, %s1298_s29, [#allocation6]  }
  0x27   : > { %s970_s15 = scalar_lea.hbm %s1608_s3, 256 }
  0x28   : > { %p971_p10 = scmp.ne.s32.totalorder %s1608_s3, %s970_s15  ;;  %p977_p4 = scmp.lt.u32.totalorder %s970_s15, %s1608_s3 }
  0x2a   : > { %p973_p11 = pnand %p971_p10, %p1325_p8 }
  0x2c   : > { %p974_p12 = pneg %p973_p11 }
  0x2e   : > { %p979_p13 = pnand %p977_p4, %p974_p12 }
  0x30   : > { %982 = shalt.err (!%p979_p13)
}
  0x31   : > { %s983_s29 = scalar_lea.vmem %s1307_s10, 256  ;;  %p991_p7 = scmp.lt.s32.totalorder %s1307_s10, %s1307_s10 }
  0x32   : > { %p984_p0 = scmp.ne.s32.totalorder %s1307_s10, %s983_s29  ;;  %p992_p9 = scmp.lt.s32.totalorder %s983_s29, %s983_s29 }
  0x34   : > { %p986_p2 = pnand %p984_p0, %p1325_p8  ;;  %p993_p10 = por %p992_p9, %p991_p7 }
  0x36   : > { %p987_p5 = pneg %p986_p2 }
  0x38   : > { %p994_p11 = pnand %p993_p10, %p987_p5 }
  0x3a   : > { %997 = shalt.err (!%p994_p11)
}
  0x3b   : > { %s1223_s21 = smov 64   ;;  %s1224_s22 = smov 4  }
  0x3c   : > { %854 = dma.hbm_to_vmem [thread:$0]  (!%p1311_p6), %s1608_s3, 256, %s1307_s10, [#allocation9], %s1223_s21, %s1223_s21, %s1224_s22  }
  0x3d   : > { %s998_s14 = scalar_lea.hbm %s1610_s5, 1024 }
  0x3e   : > { %p999_p12 = scmp.ne.s32.totalorder %s1610_s5, %s998_s14  ;;  %p1005_p0 = scmp.lt.u32.totalorder %s998_s14, %s1610_s5 }
  0x40   : > { %p1001_p4 = pnand %p999_p12, %p1325_p8 }
  0x42   : > { %p1002_p13 = pneg %p1001_p4 }
  0x44   : > { %p1007_p2 = pnand %p1005_p0, %p1002_p13 }
  0x46   : > { %1010 = shalt.err (!%p1007_p2)
}
  0x47   : > { %s1011_s10 = scalar_lea.vmem %s1315_s13, 1024  ;;  %p1019_p10 = scmp.lt.s32.totalorder %s1315_s13, %s1315_s13 }
  0x48   : > { %p1012_p5 = scmp.ne.s32.totalorder %s1315_s13, %s1011_s10  ;;  %p1020_p11 = scmp.lt.s32.totalorder %s1011_s10, %s1011_s10 }
  0x4a   : > { %p1014_p7 = pnand %p1012_p5, %p1325_p8  ;;  %p1021_p12 = por %p1020_p11, %p1019_p10 }
  0x4c   : > { %p1015_p9 = pneg %p1014_p7 }
  0x4e   : > { %p1022_p4 = pnand %p1021_p12, %p1015_p9 }
  0x50   : > { %1025 = shalt.err (!%p1022_p4)
}
  0x51   : > { %860 = dma.hbm_to_vmem [thread:$0]  (!%p1311_p6), %s1610_s5, 1024, %s1315_s13, [#allocation12], %s1223_s21, %s1223_s21, %s1224_s22  }
  0x52   : > { %s1225_s23 = smov [#allocation7]   ;;  %s1226_s9 = smov [#allocation10]  }
  0x53   : > { %s233_s28 = sshll.u32 %s1225_s23, 4  ;;  %s257_s12 = sshll.u32 %s1226_s9, 4  ;;  %s234_s28 = int_to_ptr.vmem [resolvable:$true] %s233_s28  ;;  %s258_s12 = int_to_ptr.vmem [resolvable:$true] %s257_s12 }
  0x54   : > { %s1026_s16 = scalar_lea.hbm %s1607_s2, 16 }
  0x55   : > { %p1027_p13 = scmp.ne.s32.totalorder %s1607_s2, %s1026_s16  ;;  %p1033_p5 = scmp.lt.u32.totalorder %s1026_s16, %s1607_s2 }
  0x57   : > { %p1029_p0 = pnand %p1027_p13, %p1325_p8 }
  0x59   : > { %p1030_p2 = pneg %p1029_p0 }
  0x5b   : > { %p1035_p7 = pnand %p1033_p5, %p1030_p2 }
  0x5d   : > { %1038 = shalt.err (!%p1035_p7)
}
  0x5e   : > { %s1039_s13 = scalar_lea.vmem %s234_s28, 16  ;;  %s1046_s21 = scalar_lea.vmem %s234_s28, 32 }
  0x5f   : > { %p1040_p9 = scmp.ne.s32.totalorder %s234_s28, %s1039_s13  ;;  %p1047_p12 = scmp.lt.s32.totalorder %s234_s28, %s234_s28 }
  0x60   : > { %p1048_p4 = scmp.lt.s32.totalorder %s1046_s21, %s1039_s13 }
  0x61   : > { %p1042_p10 = pnand %p1040_p9, %p1325_p8 }
  0x62   : > { %p1049_p1 = por %p1048_p4, %p1047_p12 }
  0x63   : > { %p1043_p11 = pneg %p1042_p10 }
  0x65   : > { %p1050_p3 = pnand %p1049_p1, %p1043_p11 }
  0x67   : > { %1053 = shalt.err (!%p1050_p3)
}
  0x68   : > { %851 = dma.hbm_to_vmem [thread:$0]  (!%p1311_p6), %s1607_s2, 16, %s234_s28, [#allocation6]  }
  0x69   : > { %s1054_s14 = scalar_lea.hbm %s1609_s4, 16 }
  0x6a   : > { %p1055_p13 = scmp.ne.s32.totalorder %s1609_s4, %s1054_s14  ;;  %p1061_p3 = scmp.lt.u32.totalorder %s1054_s14, %s1609_s4 }
  0x6c   : > { %p1057_p0 = pnand %p1055_p13, %p1325_p8 }
  0x6e   : > { %p1058_p1 = pneg %p1057_p0 }
  0x70   : > { %p1063_p2 = pnand %p1061_p3, %p1058_p1 }
  0x72   : > { %1066 = shalt.err (!%p1063_p2)
}
  0x73   : > { %s1067_s10 = scalar_lea.vmem %s258_s12, 16  ;;  %s1074_s28 = scalar_lea.vmem %s258_s12, 32 }
  0x74   : > { %p1068_p5 = scmp.ne.s32.totalorder %s258_s12, %s1067_s10  ;;  %p1075_p10 = scmp.lt.s32.totalorder %s258_s12, %s258_s12 }
  0x75   : > { %p1076_p11 = scmp.lt.s32.totalorder %s1074_s28, %s1067_s10 }
  0x76   : > { %p1070_p7 = pnand %p1068_p5, %p1325_p8 }
  0x77   : > { %p1077_p12 = por %p1076_p11, %p1075_p10 }
  0x78   : > { %p1071_p9 = pneg %p1070_p7 }
  0x7a   : > { %p1078_p4 = pnand %p1077_p12, %p1071_p9 }
  0x7c   : > { %1081 = shalt.err (!%p1078_p4)
}
  0x7d   : > { %857 = dma.hbm_to_vmem [thread:$0]  (!%p1311_p6), %s1609_s4, 16, %s258_s12, [#allocation9]  }
  0x7e   : > { %s1227_s21 = smov [#allocation13]   ;;  %s1082_s9 = scalar_lea.hbm %s1611_s6, 16 }
  0x7f   : > { %s281_s22 = sshll.u32 %s1227_s21, 4  ;;  %p1083_p13 = scmp.ne.s32.totalorder %s1611_s6, %s1082_s9  ;;  %s282_s22 = int_to_ptr.vmem [resolvable:$true] %s281_s22 }
  0x80   : > { %p1089_p3 = scmp.lt.u32.totalorder %s1082_s9, %s1611_s6 }
  0x81   : > { %p1085_p0 = pnand %p1083_p13, %p1325_p8 }
  0x83   : > { %p1086_p1 = pneg %p1085_p0 }
  0x85   : > { %p1091_p2 = pnand %p1089_p3, %p1086_p1 }
  0x87   : > { %1094 = shalt.err (!%p1091_p2)
}
  0x88   : > { %s1095_s12 = scalar_lea.vmem %s282_s22, 16  ;;  %s1102_s18 = scalar_lea.vmem %s282_s22, 32 }
  0x89   : > { %p1096_p5 = scmp.ne.s32.totalorder %s282_s22, %s1095_s12  ;;  %p1103_p10 = scmp.lt.s32.totalorder %s282_s22, %s282_s22 }
  0x8a   : > { %p1104_p11 = scmp.lt.s32.totalorder %s1102_s18, %s1095_s12 }
  0x8b   : > { %p1098_p7 = pnand %p1096_p5, %p1325_p8 }
  0x8c   : > { %p1105_p12 = por %p1104_p11, %p1103_p10 }
  0x8d   : > { %p1099_p9 = pneg %p1098_p7 }
  0x8f   : > { %p1106_p4 = pnand %p1105_p12, %p1099_p9 }
  0x91   : > { %1109 = shalt.err (!%p1106_p4)
}
  0x92   : > { %863 = dma.hbm_to_vmem [thread:$0]  (!%p1311_p6), %s1611_s6, 16, %s282_s22, [#allocation12]  }
  0x93   : > { %s738_s19 = sadd.s32 4294967294, %s1218_s27   ;;  %s1449_s11 = sadd.s32 1, %s1218_s27  }
  0x94   : > { %s30_s20 = ssub.s32 %s1218_s27, %s1449_s11  ;;  %s33_s13 = sadd.s32 1, %s1214_s26 }
  0x95   : > { %p31_p8 = scmp.eq.s32.totalorder %s30_s20, 0  ;;  %p40_p13 = scmp.ne.s32.totalorder %s1214_s26, %s1210_s25 }
  0x96   : > { %p41_p0 = scmp.eq.s32.totalorder %s1218_s27, 0  ;;  %p46_p1 = scmp.ne.s32.totalorder %s1210_s25, %s1206_s24 }
  0x97   : > { %s1460_s21 = scalar_select %p31_p8, %s1214_s26, %s33_s13  }
  0x98   : > { %p1462_p3 = por %p41_p0, %p40_p13  ;;  %p1620_p2 = scmp.eq.s32.totalorder %s1293_s30, 0 }
  0x99   : > { %p196_p5 = scmp.eq.s32.totalorder %s1293_s30, 1  ;;  %p202_p7 = scmp.eq.s32.totalorder %s738_s19, 1 }
  0x9a   : > { %p1468_p6 = por %p1620_p2, %p46_p1  ;;  %p878_p9 = scmp.lt.s32.totalorder %s1218_s27, 2 }
  0x9b   : > { %s292_s23 = sand.u32 1, %s1214_s26   ;;  %p1475_p10 = por %p196_p5, %p40_p13 }
  0x9c   : > { %p1479_p11 = por %p202_p7, %p46_p1  ;;  %s747_s15 = sshll.u32 %s292_s23, 3 }
  0x9d   : > { %s1622_s9 = scalar_select %p1475_p10, 1, 0 }
  0x9e   : > { %s1623_s14 = scalar_select %p1479_p11, 1, 0 }
  0x9f   : > { %s748_s16 = sshll.u32 %s1218_s27, 7  ;;  %s296_s10 = scalar_lea.vmem [#allocation2], %s747_s15 }
  0xa0   : > { %s1487_s18 = scalar_lea.hbm %s1605_s0, %s748_s16  ;;  %s303_s28 = sshll.u32 %s296_s10, 4  ;;  %s1489_s28 = int_to_ptr.vmem [resolvable:$true] %s303_s28 }
  0xa1   : > { %p1493_p12 = pnand %p878_p9, %p1462_p3  ;;  %s293_s20 = scalar_lea.sflag [#allocation3], %s292_s23 }
  0xa2   : > { %s1110_s13 = scalar_lea.hbm %s1487_s18, 128  ;;  %s1115_s17 = scalar_lea.hbm %s1605_s0, 256 }
  0xa3   : > { %p1111_p4 = scmp.ne.s32.totalorder %s1487_s18, %s1110_s13  ;;  %p1112_p8 = pneg %p1493_p12 }
  0xa4   : > { %p1116_p1 = scmp.lt.u32.totalorder %s1487_s18, %s1605_s0  ;;  %p1117_p3 = scmp.lt.u32.totalorder %s1115_s17, %s1110_s13 }
  0xa5   : > { %p1113_p13 = pnand %p1112_p8, %p1111_p4  ;;  %p1119_p5 = scmp.lt.u32.totalorder %s1110_s13, %s1487_s18 }
  0xa6   : > { %p1118_p2 = por %p1117_p3, %p1116_p1 }
  0xa7   : > { %p1114_p0 = pneg %p1113_p13 }
  0xa8   : > { %p1120_p7 = por %p1119_p5, %p1118_p2 }
  0xaa   : > { %p1121_p9 = pnand %p1120_p7, %p1114_p0 }
  0xac   : > { %1124 = shalt.err (!%p1121_p9)
}
  0xad   : > { %s1125_s23 = scalar_lea.vmem %s1489_s28, 128  ;;  %s1228_s10 = smov [#allocation2]  }
  0xae   : > { %p1126_p4 = scmp.ne.s32.totalorder %s1489_s28, %s1125_s23  ;;  %s1130_s15 = sshll.u32 %s1228_s10, 4  ;;  %s1131_s15 = int_to_ptr.vmem [resolvable:$false] %s1130_s15 }
  0xaf   : > { %s1132_s16 = scalar_lea.vmem %s1131_s15, 256  ;;  %p1133_p10 = scmp.lt.s32.totalorder %s1489_s28, %s1131_s15 }
  0xb0   : > { %p1128_p13 = pnand %p1126_p4, %p1112_p8  ;;  %p1134_p1 = scmp.lt.s32.totalorder %s1132_s16, %s1125_s23 }
  0xb2   : > { %p1129_p11 = pneg %p1128_p13  ;;  %p1135_p3 = por %p1134_p1, %p1133_p10 }
  0xb4   : > { %p1136_p2 = pnand %p1135_p3, %p1129_p11 }
  0xb6   : > { %1139 = shalt.err (!%p1136_p2)
}
  0xb7   : > { %867 = dma.hbm_to_vmem [thread:$0]  (!%p1493_p12), %s1487_s18, 128, %s1489_s28, %s293_s20  }
  0xb8   : > { %p1625_p0 = scmp.ne.s32.totalorder %s1616_s8, 0 }
  0xb9   : > { %s1525_s13 = sand.u32 (!%p1625_p0), 1, %s1210_s25  }
  0xba   : > { %312 = sbr.rel (%p1625_p0) target bundleno = 993 (0x3e1), region = 48  ;;  %s750_s17 = sshll.u32 (!%p1625_p0), %s1525_s13, 3 }
  0xbb   : > { %s315_s29 = scalar_lea.sflag (!%p1625_p0), [#allocation3], %s1525_s13  ;;  %s318_s12 = scalar_lea.vmem (!%p1625_p0), [#allocation2], %s750_s17 }
  0xc1   : > { %1185 = dma.done.wait (%p1468_p6), %s315_s29, 128  }
  0xc2   : > { %1187 = vsyncadd (%p1468_p6), %s315_s29, 4294967168  ;;  %p1626_p10 = scmp.eq.s32.totalorder %s1293_s30, 0 }
  0xc4   : > { %1189 = dma.done.wait (%p1626_p10), [#allocation6], 32   ;;  %p1627_p11 = pmov %p1626_p10 }
  0xc5   : > { %p1628_p12 = pmov %p1626_p10 }
  0xc6   : > { %1191 = vsyncadd (%p1627_p11), [#allocation6], 4294967264 }
  0xc7   : > { %1193 = dma.done.wait (%p1628_p12), [#allocation9], 272   ;;  %p1629_p8 = pmov %p1626_p10 }
  0xc9   : > { %1195 = vsyncadd (%p1629_p8), [#allocation9], 4294967024  ;;  %p1630_p5 = pmov %p1629_p8 }
  0xcb   : > { %1197 = dma.done.wait (%p1630_p5), [#allocation12], 1040   ;;  %p1631_p7 = pmov %p1630_p5 }
  0xcc   : > { %vm375_vm0 = vcmask 258048   ;;  %v1547_v0 = vld [vmem:[%s318_s12] sm:$0x1f]  ;;  %v928_v7 = vld [vmem:[#allocation8] sm:$0xff]   ;;  %v1229_v8 = vmov 0.0   ;;  %vm1230_vm1 = vmmov 0  }
  0xcd   : > { %1199 = vsyncadd (%p1631_p7), [#allocation12], 4294966256  ;;  %v376_v1 = vsel %vm375_vm0, %v1547_v0, 0.0  ;;  %789 = vmatprep.subr.bf16.mxu0 %v1229_v8  ;;  %797 = vmatprep.subr.bf16.mxu1 %v1229_v8  ;;  %v929_v9 = vld [vmem:[#allocation8 + $0x8] sm:$0xff]   ;;  %v758_v14 = vld [vmem:[#allocation5] ss:$0 sm:$0xff] }
  0xce   : > { %377 = vadd.xlane.f32.xlu0 %v376_v1  ;;  %790 = vmatpush3.bf16.msra.mxu0 %v928_v7  ;;  %v759_v16 = vld [vmem:[#allocation7] ss:$0 sm:$0xff]  ;;  %vm430_vm2 = vcmask 261120   ;;  %v930_v20 = vld [vmem:[#allocation11] sm:$0xff]   ;;  %v932_v22 = vld [vmem:[#allocation11 + $0x10] sm:$0xff]   ;;  %s774_s8 = sshll.u32 %s1293_s30, 7 }
  0xcf   : > { %793 = vmatprep.mubr.msk.bf16.mxu0 %vm1230_vm1, %v1229_v8  ;;  %791 = vmatprep.subr.bf16.mxu0 %v1229_v8  ;;  %v931_v21 = vld [vmem:[#allocation11 + $0x8] sm:$0xff]   ;;  %v933_v23 = vld [vmem:[#allocation11 + $0x18] sm:$0xff]   ;;  %v934_v24 = vld [vmem:[#allocation11 + $0x20] sm:$0xff]   ;;  %s372_s22 = scalar_lea.vmem [#allocation14], %s750_s17  ;;  %s1560_s20 = scalar_lea.hbm %s1612_s7, %s774_s8 }
  0xd0   : > { %813 = vmatprep.mubr.msk.bf16.mxu1 %vm1230_vm1, %v1229_v8  ;;  %798 = vmatpush3.bf16.msra.mxu1 %v930_v20  ;;  %v935_v25 = vld [vmem:[#allocation11 + $0x28] sm:$0xff]   ;;  %v936_v26 = vld [vmem:[#allocation11 + $0x30] sm:$0xff]   ;;  %v937_v27 = vld [vmem:[#allocation11 + $0x38] sm:$0xff]   ;;  %s611_s18 = sshll.u32 %s372_s22, 4  ;;  %s598_s30 = scalar_lea.sflag [#allocation4], %s1525_s13  ;;  %s1562_s18 = int_to_ptr.vmem [resolvable:$true] %s611_s18 }
  0xd1   : > { %799 = vmatprep.subr.bf16.mxu1 %v1229_v8  ;;  %v760_v28 = vld [vmem:[#allocation10] ss:$0 sm:$0xff]  ;;  %v764_v44 = vld [vmem:[#allocation13] ss:$0 sm:$0xff]  ;;  %s1140_s23 = scalar_lea.vmem %s1562_s18, 128  ;;  %p1632_p9 = scmp.ne.s32.totalorder %s1622_s9, 0 }
  0xd2   : > { %792 = vmatpush3.bf16.msra.mxu0 %v929_v9  ;;  %p1141_p6 = scmp.ne.s32.totalorder %s1562_s18, %s1140_s23  ;;  %s1231_s10 = smov [#allocation14]  }
  0xd3   : > { %s1144_s15 = sshll.u32 %s1231_s10, 4  ;;  %s1145_s15 = int_to_ptr.vmem [resolvable:$false] %s1144_s15 }
  0xd4   : > { %800 = vmatpush3.bf16.msra.mxu1 %v931_v21  ;;  %p1142_p4 = pnand %p1141_p6, %p1632_p9  ;;  %s1146_s16 = scalar_lea.vmem %s1145_s15, 256 }
  0xd5   : > { %801 = vmatprep.subr.bf16.mxu1 %v1229_v8  ;;  %p1147_p1 = scmp.lt.s32.totalorder %s1562_s18, %s1145_s15  ;;  %p1148_p3 = scmp.lt.s32.totalorder %s1146_s16, %s1140_s23 }
  0xd6   : > { %p1143_p13 = pneg %p1142_p4 }
  0xd7   : > { %p1149_p2 = por %p1148_p3, %p1147_p1 }
  0xd8   : > { %802 = vmatpush3.bf16.msra.mxu1 %v932_v22 }
  0xd9   : > { %803 = vmatprep.subr.bf16.mxu1 %v1229_v8  ;;  %p1150_p0 = pnand %p1149_p2, %p1143_p13 }
  0xdc   : > { %804 = vmatpush3.bf16.msra.mxu1 %v933_v23 }
  0xdd   : > { %805 = vmatprep.subr.bf16.mxu1 %v1229_v8 }
  0xe0   : > { %806 = vmatpush3.bf16.msra.mxu1 %v934_v24 }
  0xe1   : > { %807 = vmatprep.subr.bf16.mxu1 %v1229_v8 }
  0xe4   : > { %808 = vmatpush3.bf16.msra.mxu1 %v935_v25 }
  0xe5   : > { %809 = vmatprep.subr.bf16.mxu1 %v1229_v8 }
  0xe8   : > { %810 = vmatpush3.bf16.msra.mxu1 %v936_v26 }
  0xe9   : > { %811 = vmatprep.subr.bf16.mxu1 %v1229_v8 }
  0xec   : > { %812 = vmatpush3.bf16.msra.mxu1 %v937_v27 }
 0x15b   : > { %v378_v2 = vpop.xlane.xlu0 %377 }
 0x15c   : > { %v380_v3 = vmul.f32 0.03125, %v378_v2 }
 0x15e   : > { %v381_v4 = vsub.f32 %v1547_v0, %v380_v3 }
 0x160   : > { %v382_v5 = vmul.f32 %v381_v4, %v381_v4 }
 0x162   : > { %v383_v6 = vsel %vm375_vm0, %v382_v5, 0.0 }
 0x163   : > { %384 = vadd.xlane.f32.xlu0 %v383_v6 }
 0x1f0   : > { %v385_v10 = vpop.xlane.xlu0 %384 }
 0x1f1   : > { %v386_v11 = vmul.f32 0.03125, %v385_v10 }
 0x1f3   : > { %v387_v12 = vadd.f32 1e-12, %v386_v11 }
 0x1f5   : > { %938 = vrsqrt.f32 %v387_v12 }
 0x1ff   : > { %v939_v13 = vpop.eup %938 }
 0x200   : > { %v389_v15 = vmul.f32 %v939_v13, %v381_v4 }
 0x202   : > { %v397_v17 = vmul.f32 %v758_v14, %v389_v15 }
 0x204   : > { %v405_v18 = vadd.f32 %v759_v16, %v397_v17 }
 0x206   : > { %v406_v19 = vpack.c.bf16 %v405_v18, %v405_v18 }
 0x208   : > { %794 = vmatmul.mubr.msk.bf16.vlgmr.msra.gmra.mrb[0].mxu0 %vm430_vm2, %v406_v19 }
 0x2db   : > { %v468_v29 = vpop.f32.mrb[0].mxu0 }
 0x2dc   : > { %v469_v30 = vadd.f32 %v760_v28, %v468_v29  ;;  %v795_v31 = vpop.f32.mrb[1].mxu0 }
 0x2dd   : > { %v471_v32 = vpop.f32.mrb[2].mxu0 }
 0x2de   : > { %v474_v33 = vmul.f32 %v469_v30, %v469_v30  ;;  %v796_v34 = vpop.f32.mrb[3].mxu0 }
 0x2e0   : > { %v475_v35 = vmul.f32 %v474_v33, %v469_v30 }
 0x2e2   : > { %v476_v36 = vmul.f32 0.044715, %v475_v35 }
 0x2e4   : > { %v477_v37 = vadd.f32 %v476_v36, %v469_v30 }
 0x2e6   : > { %v478_v38 = vmul.f32 0.7978846, %v477_v37 }
 0x2e8   : > { %940 = vtanh.f32 %v478_v38 }
 0x2f2   : > { %v941_v39 = vpop.eup %940 }
 0x2f3   : > { %v480_v40 = vadd.f32 1.0, %v941_v39 }
 0x2f5   : > { %v481_v41 = vmul.f32 0.5, %v480_v40 }
 0x2f7   : > { %v482_v42 = vmul.f32 %v481_v41, %v469_v30 }
 0x2f9   : > { %v483_v43 = vpack.c.bf16 %v482_v42, %v482_v42 }
 0x2fb   : > { %814 = vmatmul.mubr.bf16.vlgmr.msra.gmra.mrb[0].mxu1 %v483_v43 }
 0x3ce   : > { %v589_v45 = vpop.f32.mrb[0].mxu1 }
 0x3cf   : > { %v590_v46 = vadd.f32 %v764_v44, %v589_v45  ;;  %v815_v47 = vpop.f32.mrb[1].mxu1 }
 0x3d0   : > { %v592_v48 = vpop.f32.mrb[2].mxu1 }
 0x3d1   : > { %v595_v49 = vadd.f32 %v590_v46, %v1547_v0  ;;  %v816_v50 = vpop.f32.mrb[3].mxu1 }
 0x3d3   : > { %596 = vst.msk [vmem:[%s372_s22] sm:$0x1f] %vm375_vm0, %v595_v49 }
 0x3d4   : > { %1153 = shalt.err (!%p1150_p0)
}
 0x3d5   : > { %s1154_s13 = scalar_lea.hbm %s1560_s20, 128  ;;  %s1158_s12 = scalar_lea.hbm %s1612_s7, 256 }
 0x3d6   : > { %p1155_p10 = scmp.ne.s32.totalorder %s1560_s20, %s1154_s13  ;;  %p1159_p8 = scmp.lt.u32.totalorder %s1560_s20, %s1612_s7 }
 0x3d7   : > { %p1160_p5 = scmp.lt.u32.totalorder %s1158_s12, %s1154_s13  ;;  %p1162_p6 = scmp.lt.u32.totalorder %s1154_s13, %s1560_s20 }
 0x3d8   : > { %p1156_p11 = pnand %p1155_p10, %p1632_p9 }
 0x3d9   : > { %p1161_p7 = por %p1160_p5, %p1159_p8 }
 0x3da   : > { %p1157_p12 = pneg %p1156_p11 }
 0x3db   : > { %p1163_p4 = por %p1162_p6, %p1161_p7 }
 0x3dd   : > { %p1164_p13 = pnand %p1163_p4, %p1157_p12 }
 0x3df   : > { %1167 = shalt.err (!%p1164_p13)
}
 0x3e0   : > { %843 = dma.vmem_to_hbm [thread:$0]  (%p1632_p9), %s1562_s18, 128, %s1560_s20, %s598_s30  }
 0x3e1 PF: > { %s623_s28 = sand.u32 1, %s1206_s24   ;;  %p1633_p1 = scmp.ne.s32.totalorder %s1623_s14, 0 }
 0x3e2   : > { %p1634_p3 = scmp.ge.s32.totalorder %s1218_s27, 2  ;;  %s624_s19 = scalar_lea.sflag [#allocation4], %s623_s28 }
 0x3e4   : > { %p869_p2 = pnand %p1634_p3, %p1633_p1 }
 0x3e6   : > { %1201 = dma.done.wait (!%p869_p2), %s624_s19, 128  }
 0x3e7   : > { %1203 = vsyncadd (!%p869_p2), %s624_s19, 4294967168  ;;  %p23_p0 = scmp.ge.s32.totalorder %s1449_s11, 4   ;;  %s1635_s24 = smov %s1210_s25 }
 0x3e8   : > { %s1636_s25 = smov %s1214_s26  ;;  %s1637_s26 = smov %s1460_s21 }
 0x3e9   : > { %s1638_s27 = smov %s1449_s11  ;;  %25 = sbr.rel (!%p23_p0) target bundleno = 8 (0x8), region = 117 }
 0x3f0   :  { %629 = vsyncpa [#allocation3], 1 }
 0x3f1   :  { %631 = vsyncpa [#allocation3 + $0x1], 1 }
 0x3f2   :  { %632 = vsyncpa [#allocation6], 1 }
 0x3f3   :  { %633 = vsyncpa [#allocation9], 1 }
 0x3f4   :  { %634 = vsyncpa [#allocation12], 1 }
 0x3f5   :  { %635 = vsyncpa [#allocation4], 1 }
 0x3f6   :  { %637 = vsyncpa [#allocation4 + $0x1], 1 }

// kernel: deepfake_vit_forward.7
= control target key start
LH: loop header
LB: loop body
LE: loop exit
PB: predicated region body
PF: predicated region fallthrough
CT: control target
= control target key end

     0   :  { %12 = vsyncpa [#allocation3], 0  ;;  %s2773_s0 = inlined_call_operand.hbm [shape: f32[2,5,32], index: 0, kind: input, shape index: {}, may-alias: {0,7}]   ;;  %s2774_s1 = inlined_call_operand.hbm [shape: f32[1,32], index: 1, kind: input, shape index: {}]   ;;  %s2775_s2 = inlined_call_operand.hbm [shape: f32[1,32], index: 2, kind: input, shape index: {}]   ;;  %s2776_s3 = inlined_call_operand.hbm [shape: bf16[32,96], index: 3, kind: input, shape index: {}]   ;;  %s2777_s4 = inlined_call_operand.hbm [shape: f32[1,96], index: 4, kind: input, shape index: {}]   ;;  %s2778_s5 = inlined_call_operand.hbm [shape: bf16[4,8,32], index: 5, kind: input, shape index: {}]   ;;  %s2779_s6 = inlined_call_operand.hbm [shape: f32[1,32], index: 6, kind: input, shape index: {}]   ;;  %s2780_s7 = inlined_call_operand.hbm [shape: f32[2,5,32], index: 7, kind: output, shape index: {}, may-alias: {0,7}]  }
   0x1   :  { %14 = vsyncpa [#allocation3 + $0x1], 0 }
   0x2   :  { %15 = vsyncpa [#allocation6], 0 }
   0x3   :  { %16 = vsyncpa [#allocation9], 0 }
   0x4   :  { %17 = vsyncpa [#allocation12], 0 }
   0x5   :  { %18 = vsyncpa [#allocation4], 0 }
   0x6   :  { %20 = vsyncpa [#allocation4 + $0x1], 0  ;;  %s2276_s24 = smov 0   ;;  %s2278_s25 = smov 0  }
   0x7   :  { %s2280_s26 = smov 0   ;;  %s2282_s27 = smov 0  }
   0x8 LB: > { %s2216_s28 = smov [#allocation5]   ;;  %s2297_s30 = sadd.s32 4294967295, %s2214_s27   ;;  %s2214_s27 = sphi %s2282_s27, %s2806_s27   ;;  %s2210_s26 = sphi %s2280_s26, %s2805_s26   ;;  %s2206_s25 = sphi %s2278_s25, %s2804_s25   ;;  %s2202_s24 = sphi %s2276_s24, %s2803_s24  }
   0x9   : > { %s222_s29 = sshll.u32 %s2216_s28, 4  ;;  %p1647_p0 = scmp.ge.s32.totalorder %s2214_s27, 1  ;;  %s2302_s29 = int_to_ptr.vmem [resolvable:$true] %s222_s29 }
   0xa   : > { %p2781_p1 = scmp.eq.s32.totalorder %s2297_s30, 0  ;;  %p209_p2 = scmp.lt.s32.totalorder %s2214_s27, 3 }
   0xb   : > { %s2217_s9 = smov [#allocation8]   ;;  %s2218_s12 = smov [#allocation11]  }
   0xc   : > { %p2304_p3 = pnand %p1647_p0, %p209_p2  ;;  %s243_s10 = sshll.u32 %s2217_s9, 4  ;;  %s2311_s10 = int_to_ptr.vmem [resolvable:$true] %s243_s10 }
   0xd   : > { %s267_s13 = sshll.u32 %s2218_s12, 4  ;;  %s1938_s16 = scalar_lea.hbm %s2774_s1, 16  ;;  %s2319_s13 = int_to_ptr.vmem [resolvable:$true] %s267_s13 }
   0xe   : > { %s2784_s8 = scalar_select %p2304_p3, 1, 0 }
   0xf   : > { %p1827_p5 = pneg %p2304_p3  ;;  %p1939_p7 = scmp.ne.s32.totalorder %s2774_s1, %s1938_s16 }
  0x10   : > { %p1945_p11 = scmp.lt.u32.totalorder %s1938_s16, %s2774_s1 }
  0x11   : > { %p2315_p6 = pnand %p1827_p5, %p2781_p1 }
  0x13   : > { %p2329_p8 = pneg %p2315_p6 }
  0x15   : > { %p1941_p9 = pnand %p2329_p8, %p1939_p7 }
  0x17   : > { %p1942_p10 = pneg %p1941_p9 }
  0x19   : > { %p1947_p12 = pnand %p1945_p11, %p1942_p10 }
  0x1b   : > { %1950 = shalt.err (!%p1947_p12)
}
  0x1c   : > { %s1951_s22 = scalar_lea.vmem %s2302_s29, 16  ;;  %s1958_s23 = scalar_lea.vmem %s2302_s29, 32 }
  0x1d   : > { %p1952_p13 = scmp.ne.s32.totalorder %s2302_s29, %s1951_s22  ;;  %p1959_p5 = scmp.lt.s32.totalorder %s2302_s29, %s2302_s29 }
  0x1e   : > { %p1960_p7 = scmp.lt.s32.totalorder %s1958_s23, %s1951_s22 }
  0x1f   : > { %p1954_p0 = pnand %p1952_p13, %p2329_p8 }
  0x20   : > { %p1961_p9 = por %p1960_p7, %p1959_p5 }
  0x21   : > { %p1955_p2 = pneg %p1954_p0 }
  0x23   : > { %p1962_p4 = pnand %p1961_p9, %p1955_p2 }
  0x25   : > { %1965 = shalt.err (!%p1962_p4)
}
  0x26   : > { %1830 = dma.hbm_to_vmem [thread:$0]  (!%p2315_p6), %s2774_s1, 16, %s2302_s29, [#allocation6]  }
  0x27   : > { %s1966_s15 = scalar_lea.hbm %s2776_s3, 256 }
  0x28   : > { %p1967_p10 = scmp.ne.s32.totalorder %s2776_s3, %s1966_s15  ;;  %p1973_p4 = scmp.lt.u32.totalorder %s1966_s15, %s2776_s3 }
  0x2a   : > { %p1969_p11 = pnand %p1967_p10, %p2329_p8 }
  0x2c   : > { %p1970_p12 = pneg %p1969_p11 }
  0x2e   : > { %p1975_p13 = pnand %p1973_p4, %p1970_p12 }
  0x30   : > { %1978 = shalt.err (!%p1975_p13)
}
  0x31   : > { %s1979_s29 = scalar_lea.vmem %s2311_s10, 256  ;;  %p1987_p7 = scmp.lt.s32.totalorder %s2311_s10, %s2311_s10 }
  0x32   : > { %p1980_p0 = scmp.ne.s32.totalorder %s2311_s10, %s1979_s29  ;;  %p1988_p9 = scmp.lt.s32.totalorder %s1979_s29, %s1979_s29 }
  0x34   : > { %p1982_p2 = pnand %p1980_p0, %p2329_p8  ;;  %p1989_p10 = por %p1988_p9, %p1987_p7 }
  0x36   : > { %p1983_p5 = pneg %p1982_p2 }
  0x38   : > { %p1990_p11 = pnand %p1989_p10, %p1983_p5 }
  0x3a   : > { %1993 = shalt.err (!%p1990_p11)
}
  0x3b   : > { %s2219_s21 = smov 64   ;;  %s2220_s22 = smov 4  }
  0x3c   : > { %1836 = dma.hbm_to_vmem [thread:$0]  (!%p2315_p6), %s2776_s3, 256, %s2311_s10, [#allocation9], %s2219_s21, %s2219_s21, %s2220_s22  }
  0x3d   : > { %s1994_s14 = scalar_lea.hbm %s2778_s5, 256 }
  0x3e   : > { %p1995_p12 = scmp.ne.s32.totalorder %s2778_s5, %s1994_s14  ;;  %p2001_p0 = scmp.lt.u32.totalorder %s1994_s14, %s2778_s5 }
  0x40   : > { %p1997_p4 = pnand %p1995_p12, %p2329_p8 }
  0x42   : > { %p1998_p13 = pneg %p1997_p4 }
  0x44   : > { %p2003_p2 = pnand %p2001_p0, %p1998_p13 }
  0x46   : > { %2006 = shalt.err (!%p2003_p2)
}
  0x47   : > { %s2007_s10 = scalar_lea.vmem %s2319_s13, 256  ;;  %p2015_p10 = scmp.lt.s32.totalorder %s2319_s13, %s2319_s13 }
  0x48   : > { %p2008_p5 = scmp.ne.s32.totalorder %s2319_s13, %s2007_s10  ;;  %p2016_p11 = scmp.lt.s32.totalorder %s2007_s10, %s2007_s10 }
  0x4a   : > { %p2010_p7 = pnand %p2008_p5, %p2329_p8  ;;  %p2017_p12 = por %p2016_p11, %p2015_p10 }
  0x4c   : > { %p2011_p9 = pneg %p2010_p7 }
  0x4e   : > { %p2018_p4 = pnand %p2017_p12, %p2011_p9 }
  0x50   : > { %2021 = shalt.err (!%p2018_p4)
}
  0x51   : > { %1842 = dma.hbm_to_vmem [thread:$0]  (!%p2315_p6), %s2778_s5, 256, %s2319_s13, [#allocation12], %s2219_s21, %s2219_s21, %s2220_s22  }
  0x52   : > { %s2221_s23 = smov [#allocation7]   ;;  %s2222_s9 = smov [#allocation10]  }
  0x53   : > { %s233_s28 = sshll.u32 %s2221_s23, 4  ;;  %s257_s12 = sshll.u32 %s2222_s9, 4  ;;  %s234_s28 = int_to_ptr.vmem [resolvable:$true] %s233_s28  ;;  %s258_s12 = int_to_ptr.vmem [resolvable:$true] %s257_s12 }
  0x54   : > { %s2022_s16 = scalar_lea.hbm %s2775_s2, 16 }
  0x55   : > { %p2023_p13 = scmp.ne.s32.totalorder %s2775_s2, %s2022_s16  ;;  %p2029_p5 = scmp.lt.u32.totalorder %s2022_s16, %s2775_s2 }
  0x57   : > { %p2025_p0 = pnand %p2023_p13, %p2329_p8 }
  0x59   : > { %p2026_p2 = pneg %p2025_p0 }
  0x5b   : > { %p2031_p7 = pnand %p2029_p5, %p2026_p2 }
  0x5d   : > { %2034 = shalt.err (!%p2031_p7)
}
  0x5e   : > { %s2035_s13 = scalar_lea.vmem %s234_s28, 16  ;;  %s2042_s21 = scalar_lea.vmem %s234_s28, 32 }
  0x5f   : > { %p2036_p9 = scmp.ne.s32.totalorder %s234_s28, %s2035_s13  ;;  %p2043_p12 = scmp.lt.s32.totalorder %s234_s28, %s234_s28 }
  0x60   : > { %p2044_p4 = scmp.lt.s32.totalorder %s2042_s21, %s2035_s13 }
  0x61   : > { %p2038_p10 = pnand %p2036_p9, %p2329_p8 }
  0x62   : > { %p2045_p1 = por %p2044_p4, %p2043_p12 }
  0x63   : > { %p2039_p11 = pneg %p2038_p10 }
  0x65   : > { %p2046_p3 = pnand %p2045_p1, %p2039_p11 }
  0x67   : > { %2049 = shalt.err (!%p2046_p3)
}
  0x68   : > { %1833 = dma.hbm_to_vmem [thread:$0]  (!%p2315_p6), %s2775_s2, 16, %s234_s28, [#allocation6]  }
  0x69   : > { %s2050_s14 = scalar_lea.hbm %s2777_s4, 16 }
  0x6a   : > { %p2051_p13 = scmp.ne.s32.totalorder %s2777_s4, %s2050_s14  ;;  %p2057_p3 = scmp.lt.u32.totalorder %s2050_s14, %s2777_s4 }
  0x6c   : > { %p2053_p0 = pnand %p2051_p13, %p2329_p8 }
  0x6e   : > { %p2054_p1 = pneg %p2053_p0 }
  0x70   : > { %p2059_p2 = pnand %p2057_p3, %p2054_p1 }
  0x72   : > { %2062 = shalt.err (!%p2059_p2)
}
  0x73   : > { %s2063_s10 = scalar_lea.vmem %s258_s12, 16  ;;  %s2070_s28 = scalar_lea.vmem %s258_s12, 32 }
  0x74   : > { %p2064_p5 = scmp.ne.s32.totalorder %s258_s12, %s2063_s10  ;;  %p2071_p10 = scmp.lt.s32.totalorder %s258_s12, %s258_s12 }
  0x75   : > { %p2072_p11 = scmp.lt.s32.totalorder %s2070_s28, %s2063_s10 }
  0x76   : > { %p2066_p7 = pnand %p2064_p5, %p2329_p8 }
  0x77   : > { %p2073_p12 = por %p2072_p11, %p2071_p10 }
  0x78   : > { %p2067_p9 = pneg %p2066_p7 }
  0x7a   : > { %p2074_p4 = pnand %p2073_p12, %p2067_p9 }
  0x7c   : > { %2077 = shalt.err (!%p2074_p4)
}
  0x7d   : > { %1839 = dma.hbm_to_vmem [thread:$0]  (!%p2315_p6), %s2777_s4, 16, %s258_s12, [#allocation9]  }
  0x7e   : > { %s2223_s21 = smov [#allocation13]   ;;  %s2078_s9 = scalar_lea.hbm %s2779_s6, 16 }
  0x7f   : > { %s281_s22 = sshll.u32 %s2223_s21, 4  ;;  %p2079_p13 = scmp.ne.s32.totalorder %s2779_s6, %s2078_s9  ;;  %s282_s22 = int_to_ptr.vmem [resolvable:$true] %s281_s22 }
  0x80   : > { %p2085_p3 = scmp.lt.u32.totalorder %s2078_s9, %s2779_s6 }
  0x81   : > { %p2081_p0 = pnand %p2079_p13, %p2329_p8 }
  0x83   : > { %p2082_p1 = pneg %p2081_p0 }
  0x85   : > { %p2087_p2 = pnand %p2085_p3, %p2082_p1 }
  0x87   : > { %2090 = shalt.err (!%p2087_p2)
}
  0x88   : > { %s2091_s12 = scalar_lea.vmem %s282_s22, 16  ;;  %s2098_s18 = scalar_lea.vmem %s282_s22, 32 }
  0x89   : > { %p2092_p5 = scmp.ne.s32.totalorder %s282_s22, %s2091_s12  ;;  %p2099_p10 = scmp.lt.s32.totalorder %s282_s22, %s282_s22 }
  0x8a   : > { %p2100_p11 = scmp.lt.s32.totalorder %s2098_s18, %s2091_s12 }
  0x8b   : > { %p2094_p7 = pnand %p2092_p5, %p2329_p8 }
  0x8c   : > { %p2101_p12 = por %p2100_p11, %p2099_p10 }
  0x8d   : > { %p2095_p9 = pneg %p2094_p7 }
  0x8f   : > { %p2102_p4 = pnand %p2101_p12, %p2095_p9 }
  0x91   : > { %2105 = shalt.err (!%p2102_p4)
}
  0x92   : > { %1845 = dma.hbm_to_vmem [thread:$0]  (!%p2315_p6), %s2779_s6, 16, %s282_s22, [#allocation12]  }
  0x93   : > { %s1646_s19 = sadd.s32 4294967294, %s2214_s27   ;;  %s2453_s11 = sadd.s32 1, %s2214_s27  }
  0x94   : > { %s30_s20 = ssub.s32 %s2214_s27, %s2453_s11  ;;  %s33_s13 = sadd.s32 1, %s2210_s26 }
  0x95   : > { %p31_p8 = scmp.eq.s32.totalorder %s30_s20, 0  ;;  %p40_p13 = scmp.ne.s32.totalorder %s2210_s26, %s2206_s25 }
  0x96   : > { %p41_p0 = scmp.eq.s32.totalorder %s2214_s27, 0  ;;  %p46_p1 = scmp.ne.s32.totalorder %s2206_s25, %s2202_s24 }
  0x97   : > { %s2464_s21 = scalar_select %p31_p8, %s2210_s26, %s33_s13  }
  0x98   : > { %p2466_p3 = por %p41_p0, %p40_p13  ;;  %p2788_p2 = scmp.eq.s32.totalorder %s2297_s30, 0 }
  0x99   : > { %p196_p5 = scmp.eq.s32.totalorder %s2297_s30, 1  ;;  %p202_p7 = scmp.eq.s32.totalorder %s1646_s19, 1 }
  0x9a   : > { %p2472_p6 = por %p2788_p2, %p46_p1  ;;  %p1860_p9 = scmp.lt.s32.totalorder %s2214_s27, 2 }
  0x9b   : > { %s292_s23 = sand.u32 1, %s2210_s26   ;;  %p2479_p10 = por %p196_p5, %p40_p13 }
  0x9c   : > { %p2483_p11 = por %p202_p7, %p46_p1  ;;  %s1655_s15 = sshll.u32 %s292_s23, 3 }
  0x9d   : > { %s2790_s9 = scalar_select %p2479_p10, 1, 0 }
  0x9e   : > { %s2791_s14 = scalar_select %p2483_p11, 1, 0 }
  0x9f   : > { %s1656_s16 = sshll.u32 %s2214_s27, 7  ;;  %s296_s10 = scalar_lea.vmem [#allocation2], %s1655_s15 }
  0xa0   : > { %s2491_s18 = scalar_lea.hbm %s2773_s0, %s1656_s16  ;;  %s303_s28 = sshll.u32 %s296_s10, 4  ;;  %s2493_s28 = int_to_ptr.vmem [resolvable:$true] %s303_s28 }
  0xa1   : > { %p2497_p12 = pnand %p1860_p9, %p2466_p3  ;;  %s293_s20 = scalar_lea.sflag [#allocation3], %s292_s23 }
  0xa2   : > { %s2106_s13 = scalar_lea.hbm %s2491_s18, 128  ;;  %s2111_s17 = scalar_lea.hbm %s2773_s0, 256 }
  0xa3   : > { %p2107_p4 = scmp.ne.s32.totalorder %s2491_s18, %s2106_s13  ;;  %p2108_p8 = pneg %p2497_p12 }
  0xa4   : > { %p2112_p1 = scmp.lt.u32.totalorder %s2491_s18, %s2773_s0  ;;  %p2113_p3 = scmp.lt.u32.totalorder %s2111_s17, %s2106_s13 }
  0xa5   : > { %p2109_p13 = pnand %p2108_p8, %p2107_p4  ;;  %p2115_p5 = scmp.lt.u32.totalorder %s2106_s13, %s2491_s18 }
  0xa6   : > { %p2114_p2 = por %p2113_p3, %p2112_p1 }
  0xa7   : > { %p2110_p0 = pneg %p2109_p13 }
  0xa8   : > { %p2116_p7 = por %p2115_p5, %p2114_p2 }
  0xaa   : > { %p2117_p9 = pnand %p2116_p7, %p2110_p0 }
  0xac   : > { %2120 = shalt.err (!%p2117_p9)
}
  0xad   : > { %s2121_s23 = scalar_lea.vmem %s2493_s28, 128  ;;  %s2224_s10 = smov [#allocation2]  }
  0xae   : > { %p2122_p4 = scmp.ne.s32.totalorder %s2493_s28, %s2121_s23  ;;  %s2126_s15 = sshll.u32 %s2224_s10, 4  ;;  %s2127_s15 = int_to_ptr.vmem [resolvable:$false] %s2126_s15 }
  0xaf   : > { %s2128_s16 = scalar_lea.vmem %s2127_s15, 256  ;;  %p2129_p10 = scmp.lt.s32.totalorder %s2493_s28, %s2127_s15 }
  0xb0   : > { %p2124_p13 = pnand %p2122_p4, %p2108_p8  ;;  %p2130_p1 = scmp.lt.s32.totalorder %s2128_s16, %s2121_s23 }
  0xb2   : > { %p2125_p11 = pneg %p2124_p13  ;;  %p2131_p3 = por %p2130_p1, %p2129_p10 }
  0xb4   : > { %p2132_p2 = pnand %p2131_p3, %p2125_p11 }
  0xb6   : > { %2135 = shalt.err (!%p2132_p2)
}
  0xb7   : > { %1849 = dma.hbm_to_vmem [thread:$0]  (!%p2497_p12), %s2491_s18, 128, %s2493_s28, %s293_s20  }
  0xb8   : > { %p2793_p0 = scmp.ne.s32.totalorder %s2784_s8, 0 }
  0xb9   : > { %s2529_s13 = sand.u32 (!%p2793_p0), 1, %s2206_s25  }
  0xba   : > { %312 = sbr.rel (%p2793_p0) target bundleno = 2034 (0x7f2), region = 48  ;;  %s1658_s17 = sshll.u32 (!%p2793_p0), %s2529_s13, 3 }
  0xbb   : > { %s315_s29 = scalar_lea.sflag (!%p2793_p0), [#allocation3], %s2529_s13  ;;  %s318_s12 = scalar_lea.vmem (!%p2793_p0), [#allocation2], %s1658_s17 }
  0xc1   : > { %2181 = dma.done.wait (%p2472_p6), %s315_s29, 128  }
  0xc2   : > { %2183 = vsyncadd (%p2472_p6), %s315_s29, 4294967168  ;;  %p2794_p10 = scmp.eq.s32.totalorder %s2297_s30, 0 }
  0xc4   : > { %2185 = dma.done.wait (%p2794_p10), [#allocation6], 32   ;;  %p2795_p11 = pmov %p2794_p10 }
  0xc5   : > { %p2796_p12 = pmov %p2794_p10 }
  0xc6   : > { %2187 = vsyncadd (%p2795_p11), [#allocation6], 4294967264 }
  0xc7   : > { %2189 = dma.done.wait (%p2796_p12), [#allocation9], 272   ;;  %p2797_p8 = pmov %p2794_p10 }
  0xc9   : > { %2191 = vsyncadd (%p2797_p8), [#allocation9], 4294967024  ;;  %p2798_p5 = pmov %p2797_p8 }
  0xcb   : > { %2193 = dma.done.wait (%p2798_p5), [#allocation12], 272   ;;  %p2799_p7 = pmov %p2798_p5 }
  0xcc   : > { %vm375_vm0 = vcmask 258048   ;;  %v2551_v0 = vld [vmem:[%s318_s12] sm:$0x1f]  ;;  %v1918_v7 = vld [vmem:[#allocation8] sm:$0xff]   ;;  %v2225_v8 = vmov 0.0   ;;  %vm2226_vm1 = vmmov 0   ;;  %v489_v31 = vlaneseq }
  0xcd   : > { %2195 = vsyncadd (%p2799_p7), [#allocation12], 4294967024  ;;  %v376_v1 = vsel %vm375_vm0, %v2551_v0, 0.0  ;;  %1719 = vmatprep.subr.bf16.mxu0 %v2225_v8  ;;  %1723 = vmatprep.mubr.msk.bf16.mxu0 %vm2226_vm1, %v2225_v8  ;;  %v1919_v9 = vld [vmem:[#allocation8 + $0x8] sm:$0xff]   ;;  %v1666_v14 = vld [vmem:[#allocation5] ss:$0 sm:$0xff] }
  0xce   : > { %377 = vadd.xlane.f32.xlu0 %v376_v1  ;;  %1720 = vmatpush3.bf16.msra.mxu0 %v1918_v7  ;;  %v1667_v16 = vld [vmem:[#allocation7] ss:$0 sm:$0xff]  ;;  %vm430_vm2 = vcmask 261120   ;;  %v1668_v20 = vld [vmem:[#allocation10] ss:$0 sm:$0xff]  ;;  %s2227_s8 = smov 104  }
  0xcf   : > { %1727 = vmatprep.subr.bf16.mxu1 %v2225_v8  ;;  %1721 = vmatprep.subr.bf16.mxu0 %v2225_v8  ;;  %s2228_s22 = smov 120   ;;  %s2229_s18 = smov 112   ;;  %v2231_v29 = vmov 1983009808   ;;  %v490_v33 = vshrl.u32 %v489_v31, 7  ;;  %vm868_vm3 = vcmask 64512  }
  0xd0   : > { %1729 = vmatprep.mubr.msk.bf16.mxu1 %vm2226_vm1, %v2225_v8  ;;  %s2230_s28 = smov 96   ;;  %v487_v30 = vunpack.c.l.s4 %v2231_v29  ;;  %v2232_v35 = vmov 1934713408   ;;  %vm1057_vm4 = vcmask 36864   ;;  %s2233_s19 = smov 64   ;;  %vm1110_vm5 = vcmask 1041408  }
  0xd1   : > { %v519_v36 = vunpack.c.l.s4 %v2232_v35  ;;  %vm1111_vm6 = vcmask 1042432   ;;  %vm1106_vm7 = vcmask 39936   ;;  %vm1306_vm8 = vcmask 1043456   ;;  %s1689_s20 = sshll.u32 %s2297_s30, 7  ;;  %s372_s23 = scalar_lea.vmem [#allocation14], %s1658_s17 }
  0xd2   : > { %1722 = vmatpush3.bf16.msra.mxu0 %v1919_v9  ;;  %v488_v32 = vunpack.c.0.s8 %v487_v30  ;;  %s1519_s10 = sshll.u32 %s372_s23, 4  ;;  %s2728_s29 = scalar_lea.hbm %s2780_s7, %s1689_s20  ;;  %s2730_s10 = int_to_ptr.vmem [resolvable:$true] %s1519_s10 }
  0xd3   : > { %1733 = vmatprep.subr.bf16.mxu0 %v2225_v8  ;;  %v520_v41 = vunpack.c.0.s8 %v519_v36  ;;  %s1506_s12 = scalar_lea.sflag [#allocation4], %s2529_s13  ;;  %s2136_s30 = scalar_lea.vmem %s2730_s10, 128 }
  0xd4   : > { %v2584_v38 = vsub.s32 %v488_v32, %v490_v33  ;;  %p2137_p6 = scmp.ne.s32.totalorder %s2730_s10, %s2136_s30  ;;  %p2800_p9 = scmp.ne.s32.totalorder %s2790_s9, 0 }
  0xd5   : > { %v2590_v45 = vsub.s32 %v520_v41, %v490_v33  ;;  %s2235_s17 = smov [#allocation14]  }
  0xd6   : > { %p2138_p4 = pnand %p2137_p6, %p2800_p9 }
  0xd8   : > { %p2139_p13 = pneg %p2138_p4 }
 0x15b   : > { %v378_v2 = vpop.xlane.xlu0 %377 }
 0x15c   : > { %v380_v3 = vmul.f32 0.03125, %v378_v2 }
 0x15e   : > { %v381_v4 = vsub.f32 %v2551_v0, %v380_v3 }
 0x160   : > { %v382_v5 = vmul.f32 %v381_v4, %v381_v4 }
 0x162   : > { %v383_v6 = vsel %vm375_vm0, %v382_v5, 0.0 }
 0x163   : > { %384 = vadd.xlane.f32.xlu0 %v383_v6 }
 0x1f0   : > { %v385_v10 = vpop.xlane.xlu0 %384 }
 0x1f1   : > { %v386_v11 = vmul.f32 0.03125, %v385_v10 }
 0x1f3   : > { %v387_v12 = vadd.f32 1e-12, %v386_v11 }
 0x1f5   : > { %1920 = vrsqrt.f32 %v387_v12 }
 0x1ff   : > { %v1921_v13 = vpop.eup %1920 }
 0x200   : > { %v389_v15 = vmul.f32 %v1921_v13, %v381_v4 }
 0x202   : > { %v397_v17 = vmul.f32 %v1666_v14, %v389_v15 }
 0x204   : > { %v405_v18 = vadd.f32 %v1667_v16, %v397_v17 }
 0x206   : > { %v406_v19 = vpack.c.bf16 %v405_v18, %v405_v18 }
 0x208   : > { %1724 = vmatmul.mubr.msk.bf16.vlgmr.msra.gmra.mrb[0].mxu0 %vm430_vm2, %v406_v19 }
 0x209   : > { %1735 = vmatprep.mubr.msk.bf16.mxu0 %vm2226_vm1, %v2225_v8 }
 0x2db   : > { %v468_v21 = vpop.f32.mrb[0].mxu0 }
 0x2dc   : > { %v2567_v22 = vadd.f32 %v1668_v20, %v468_v21  ;;  %v1725_v23 = vpop.f32.mrb[1].mxu0 }
 0x2dd   : > { %v471_v24 = vpop.f32.mrb[2].mxu0 }
 0x2de   : > { %481 = vrot.lane.b32.xlu0 %v2567_v22, %s2227_s8  ;;  %475 = vrot.lane.b32.xlu1 %v2567_v22, %s2228_s22  ;;  %v1726_v25 = vpop.f32.mrb[3].mxu0  ;;  %s2140_s8 = sshll.u32 %s2235_s17, 4  ;;  %s2141_s8 = int_to_ptr.vmem [resolvable:$false] %s2140_s8 }
 0x2df   : > { %s2142_s22 = scalar_lea.vmem %s2141_s8, 256  ;;  %p2143_p1 = scmp.lt.s32.totalorder %s2730_s10, %s2141_s8 }
 0x2e0   : > { %p2144_p3 = scmp.lt.s32.totalorder %s2142_s22, %s2136_s30 }
 0x2e2   : > { %478 = vrot.lane.b32.xlu1 %v2567_v22, %s2229_s18  ;;  %p2145_p2 = por %p2144_p3, %p2143_p1 }
 0x2e4   : > { %p2146_p0 = pnand %p2145_p2, %p2139_p13 }
 0x2e6   : > { %604 = vrot.lane.b32.xlu1 %v2567_v22, %s2230_s28 }
 0x350   : > { %v2573_v26 = vpop.permute.xlu1 %475  ;;  %v2579_v28 = vpop.permute.xlu0 %481 }
 0x351   : > { %606 = vrot.lane.b32.xlu1 %v2573_v26, %s2230_s28  ;;  %v500_v39 = vcombine.low %v2573_v26, %v2579_v28  ;;  %v501_v54 = vcombine.high %v2573_v26, %v2579_v28 }
 0x353   : > { %v508_v43 = vrot.slane %v500_v39, %v2584_v38  ;;  %v515_v2 = vrot.slane %v501_v54, %v2584_v38 }
 0x354   : > { %v2576_v27 = vpop.permute.xlu1 %478 }
 0x355   : > { %608 = vrot.lane.b32.xlu1 %v2576_v27, %s2230_s28  ;;  %v484_v37 = vcombine.low %v2567_v22, %v2576_v27  ;;  %v485_v50 = vcombine.high %v2567_v22, %v2576_v27 }
 0x357   : > { %v492_v42 = vrot.slane %v484_v37, %v2584_v38  ;;  %v499_v61 = vrot.slane %v485_v50, %v2584_v38 }
 0x358   : > { %v605_v34 = vpop.permute.xlu1 %604 }
 0x359   : > { %610 = vrot.lane.b32.xlu1 %v2579_v28, %s2230_s28  ;;  %v516_v46 = vcombine.low %v492_v42, %v508_v43  ;;  %v517_v47 = vcombine.high %v492_v42, %v508_v43  ;;  %v532_v9 = vcombine.low %v499_v61, %v515_v2 }
 0x35b   : > { %v524_v55 = vrot.slane %v516_v46, %v2590_v45  ;;  %v531_v56 = vrot.slane %v517_v47, %v2590_v45  ;;  %v557_v17 = vrot.slane %v532_v9, %v2590_v45 }
 0x35d   : > { %v535_v3 = vcombine.low %v524_v55, %v531_v56  ;;  %v1672_v4 = vcombine.high %v524_v55, %v531_v56  ;;  %v564_v25 = vrot.slane %v557_v17, %v2584_v38 }
 0x35f   : > { %v542_v12 = vrot.slane %v535_v3, %v2584_v38  ;;  %v550_v16 = vrot.slane %v1672_v4, %v2584_v38  ;;  %v588_v36 = vrot.slane %v564_v25, %v2590_v45  ;;  %v581_v46 = vcombine.high %v564_v25, %v2225_v8 }
 0x361   : > { %v565_v24 = vcombine.low %v542_v12, %v550_v16  ;;  %v566_v42 = vcombine.high %v542_v12, %v550_v16  ;;  %v595_v54 = vrot.slane %v581_v46, %v2590_v45 }
 0x3c3   : > { %v607_v40 = vpop.permute.xlu1 %606 }
 0x3c7   : > { %v609_v44 = vpop.permute.xlu1 %608 }
 0x3c8   : > { %v616_v48 = vcombine.low %v605_v34, %v609_v44  ;;  %v617_v49 = vcombine.high %v605_v34, %v609_v44  ;;  %v573_v34 = vrot.slane %v565_v24, %v2590_v45 }
 0x3ca   : > { %v624_v57 = vrot.slane %v616_v48, %v2584_v38  ;;  %v631_v58 = vrot.slane %v617_v49, %v2584_v38  ;;  %v596_v43 = vcombine.low %v573_v34, %v588_v36  ;;  %v597_v44 = vcombine.high %v573_v34, %v588_v36 }
 0x3cb   : > { %v611_v51 = vpop.permute.xlu1 %610 }
 0x3cc   : > { %v632_v52 = vcombine.low %v607_v40, %v611_v51  ;;  %v633_v53 = vcombine.high %v607_v40, %v611_v51  ;;  %v600_v49 = vpack.c.bf16 %v596_v43, %v596_v43  ;;  %v601_v50 = vpack.c.bf16 %v597_v44, %v597_v44 }
 0x3cd   : > { %v580_v51 = vrot.slane %v566_v42, %v2590_v45 }
 0x3ce   : > { %v640_v59 = vrot.slane %v632_v52, %v2584_v38  ;;  %v647_v60 = vrot.slane %v633_v53, %v2584_v38 }
 0x3cf   : > { %v598_v55 = vcombine.low %v580_v51, %v595_v54  ;;  %v599_v56 = vcombine.high %v580_v51, %v595_v54 }
 0x3d0   : > { %v648_v62 = vcombine.low %v624_v57, %v640_v59  ;;  %v649_v63 = vcombine.high %v624_v57, %v640_v59  ;;  %v664_v1 = vcombine.low %v631_v58, %v647_v60 }
 0x3d1   : > { %v602_v57 = vpack.c.bf16 %v598_v55, %v598_v55  ;;  %v603_v58 = vpack.c.bf16 %v599_v56, %v599_v56 }
 0x3d2   : > { %v656_v5 = vrot.slane %v648_v62, %v2590_v45  ;;  %v663_v6 = vrot.slane %v649_v63, %v2590_v45  ;;  %v689_v7 = vrot.slane %v664_v1, %v2590_v45 }
 0x3d4   : > { %v667_v10 = vcombine.low %v656_v5, %v663_v6  ;;  %v1673_v11 = vcombine.high %v656_v5, %v663_v6  ;;  %v696_v15 = vrot.slane %v689_v7, %v2584_v38 }
 0x3d6   : > { %v674_v13 = vrot.slane %v667_v10, %v2584_v38  ;;  %v682_v14 = vrot.slane %v1673_v11, %v2584_v38  ;;  %v713_v21 = vcombine.high %v696_v15, %v2225_v8  ;;  %v720_v23 = vrot.slane %v696_v15, %v2590_v45 }
 0x3d8   : > { %v697_v18 = vcombine.low %v674_v13, %v682_v14  ;;  %v698_v19 = vcombine.high %v674_v13, %v682_v14  ;;  %v727_v35 = vrot.slane %v713_v21, %v2590_v45 }
 0x3da   : > { %v705_v20 = vrot.slane %v697_v18, %v2590_v45  ;;  %v712_v31 = vrot.slane %v698_v19, %v2590_v45 }
 0x3dc   : > { %v728_v29 = vcombine.low %v705_v20, %v720_v23  ;;  %v729_v30 = vcombine.high %v705_v20, %v720_v23  ;;  %v730_v40 = vcombine.low %v712_v31, %v727_v35  ;;  %v731_v41 = vcombine.high %v712_v31, %v727_v35 }
 0x3de   : > { %v732_v32 = vpack.c.bf16 %v728_v29, %v728_v29  ;;  %v733_v33 = vpack.c.bf16 %v729_v30, %v729_v30  ;;  %v734_v47 = vpack.c.bf16 %v730_v40, %v730_v40  ;;  %v735_v48 = vpack.c.bf16 %v731_v41, %v731_v41 }
 0x3e0   : > { %v873_v37 = vsel %vm868_vm3, %v732_v32, 0  ;;  %v919_v39 = vsel %vm868_vm3, %v733_v33, 0  ;;  %v965_v52 = vsel %vm868_vm3, %v734_v47, 0  ;;  %v1011_v53 = vsel %vm868_vm3, %v735_v48, 0 }
 0x3e1   : > { %1728 = vmatpush3.bf16.xpose.msra.mxu1 %v873_v37  ;;  %1734 = vmatpush3.bf16.xpose.msra.mxu0 %v919_v39 }
 0x3e2   : > { %1739 = vmatprep.subr.bf16.mxu1 %v2225_v8  ;;  %1745 = vmatprep.subr.bf16.mxu0 %v2225_v8 }
 0x3e8   : > { %1730 = vmatmul.mubr.msk.bf16.vlgmr.msra.gmra.mrb[0].mxu1 %vm868_vm3, %v600_v49  ;;  %1736 = vmatmul.mubr.msk.bf16.vlgmr.msra.gmra.mrb[4].mxu0 %vm868_vm3, %v601_v50 }
 0x3e9   : > { %1740 = vmatpush3.bf16.xpose.msra.mxu1 %v965_v52  ;;  %1746 = vmatpush3.bf16.xpose.msra.mxu0 %v1011_v53 }
 0x3ea   : > { %1741 = vmatprep.mubr.msk.bf16.mxu1 %vm2226_vm1, %v2225_v8  ;;  %1747 = vmatprep.mubr.msk.bf16.mxu0 %vm2226_vm1, %v2225_v8 }
 0x3eb   : > { %1751 = vmatprep.subr.bf16.mxu1 %v2225_v8  ;;  %1757 = vmatprep.subr.bf16.mxu0 %v2225_v8 }
 0x3f0   : > { %1742 = vmatmul.mubr.msk.bf16.vlgmr.msra.gmra.mrb[4].mxu1 %vm868_vm3, %v602_v57  ;;  %1748 = vmatmul.mubr.msk.bf16.vlgmr.msra.gmra.mrb[8].mxu0 %vm868_vm3, %v603_v58 }
 0x3f1   : > { %1753 = vmatprep.mubr.msk.bf16.mxu1 %vm2226_vm1, %v2225_v8  ;;  %1759 = vmatprep.mubr.msk.bf16.mxu0 %vm2226_vm1, %v2225_v8 }
 0x4bb   : > { %v909_v59 = vpop.f32.mrb[0].mxu1  ;;  %v955_v60 = vpop.f32.mrb[4].mxu0 }
 0x4bc   : > { %v1053_v61 = vmul.f32 0.35355338, %v909_v59  ;;  %v1054_v62 = vmul.f32 0.35355338, %v955_v60  ;;  %v1731_v63 = vpop.f32.mrb[1].mxu1  ;;  %v1737_v1 = vpop.f32.mrb[5].mxu0 }
 0x4bd   : > { %v912_v2 = vpop.f32.mrb[2].mxu1  ;;  %v958_v3 = vpop.f32.mrb[6].mxu0 }
 0x4be   : > { %v1732_v4 = vpop.f32.mrb[3].mxu1  ;;  %v1738_v5 = vpop.f32.mrb[7].mxu0  ;;  %v1058_v6 = vsel %vm1057_vm4, %v1053_v61, -inf  ;;  %v1061_v7 = vsel %vm1057_vm4, %v1054_v62, -inf }
 0x4bf   : > { %1059 = vmax.xlane.f32.xlu1 %v1058_v6  ;;  %1062 = vmax.xlane.f32.xlu0 %v1061_v7 }
 0x4c3   : > { %v1001_v9 = vpop.f32.mrb[4].mxu1  ;;  %v1047_v10 = vpop.f32.mrb[8].mxu0 }
 0x4c4   : > { %v1055_v11 = vmul.f32 0.35355338, %v1001_v9  ;;  %v1056_v12 = vmul.f32 0.35355338, %v1047_v10  ;;  %v1743_v13 = vpop.f32.mrb[5].mxu1  ;;  %v1749_v14 = vpop.f32.mrb[9].mxu0 }
 0x4c5   : > { %v1004_v15 = vpop.f32.mrb[6].mxu1  ;;  %v1050_v16 = vpop.f32.mrb[10].mxu0  ;;  %v2234_v9 = vmov 65535  }
 0x4c6   : > { %v1744_v17 = vpop.f32.mrb[7].mxu1  ;;  %v1750_v18 = vpop.f32.mrb[11].mxu0  ;;  %v1064_v19 = vsel %vm1057_vm4, %v1055_v11, -inf  ;;  %v1067_v20 = vsel %vm1057_vm4, %v1056_v12, -inf  ;;  %v1112_v10 = vsel %vm1110_vm5, 4294967295, %v2234_v9 }
 0x4c7   : > { %1065 = vmax.xlane.f32.xlu1 %v1064_v19  ;;  %1068 = vmax.xlane.f32.xlu0 %v1067_v20  ;;  %v1113_v20 = vsel %vm1111_vm6, %v1112_v10, 0 }
 0x4d8   : > { %736 = vrot.lane.b32.xlu1 %v2567_v22, %s2233_s19 }
 0x54c   : > { %v1060_v21 = vpop.xlane.xlu1 %1059  ;;  %v1063_v23 = vpop.xlane.xlu0 %1062 }
 0x54d   : > { %v1070_v24 = vsub.f32 %v1053_v61, %v1060_v21  ;;  %v1071_v25 = vsub.f32 %v1054_v62, %v1063_v23 }
 0x54f   : > { %v1074_v29 = vmul.f32 1.442695, %v1070_v24  ;;  %v1076_v30 = vmul.f32 1.442695, %v1071_v25 }
 0x551   : > { %1922 = vpow2.f32 %v1074_v29 }
 0x552   : > { %1924 = vpow2.f32 %v1076_v30 }
 0x554   : > { %v1066_v22 = vpop.xlane.xlu1 %1065  ;;  %v1069_v36 = vpop.xlane.xlu0 %1068 }
 0x555   : > { %v1072_v35 = vsub.f32 %v1055_v11, %v1066_v22  ;;  %v1073_v37 = vsub.f32 %v1056_v12, %v1069_v36 }
 0x557   : > { %v1078_v39 = vmul.f32 1.442695, %v1072_v35  ;;  %v1080_v40 = vmul.f32 1.442695, %v1073_v37 }
 0x559   : > { %1926 = vpow2.f32 %v1078_v39 }
 0x55a   : > { %1928 = vpow2.f32 %v1080_v40 }
 0x55b   : > { %v2649_v31 = vpop.eup %1922 }
 0x55c   : > { %v2651_v32 = vpop.eup %1924  ;;  %v1082_v33 = vsel %vm1057_vm4, %v2649_v31, 0.0 }
 0x55d   : > { %1083 = vadd.xlane.f32.xlu1 %v1082_v33  ;;  %v1085_v34 = vsel %vm1057_vm4, %v2651_v32, 0.0 }
 0x55e   : > { %1086 = vadd.xlane.f32.xlu0 %v1085_v34 }
 0x563   : > { %v2660_v41 = vpop.eup %1926 }
 0x564   : > { %v2662_v42 = vpop.eup %1928  ;;  %v1088_v43 = vsel %vm1057_vm4, %v2660_v41, 0.0 }
 0x56e   : > { %740 = vrot.lane.b32.xlu1 %v2576_v27, %s2233_s19  ;;  %v1091_v27 = vsel %vm1057_vm4, %v2662_v42, 0.0 }
 0x572   : > { %742 = vrot.lane.b32.xlu1 %v2579_v28, %s2233_s19 }
 0x574   : > { %738 = vrot.lane.b32.xlu0 %v2573_v26, %s2233_s19  ;;  %v737_v26 = vpop.permute.xlu1 %736 }
 0x593   : > { %1089 = vadd.xlane.f32.xlu0 %v1088_v43 }
 0x596   : > { %1092 = vadd.xlane.f32.xlu1 %v1091_v27 }
 0x5ea   : > { %v1084_v28 = vpop.xlane.xlu1 %1083 }
 0x5eb   : > { %v1087_v44 = vpop.xlane.xlu0 %1086  ;;  %1930 = vrcp.f32 %v1084_v28  ;;  %v1299_v28 = vld [vmem:[#allocation11] sm:$0xf] }
 0x5ec   : > { %1932 = vrcp.f32 %v1087_v44  ;;  %v1300_v44 = vld [vmem:[#allocation11 + $0x4] sm:$0xf] }
 0x5ee   : > { %v741_v46 = vpop.permute.xlu1 %740 }
 0x5ef   : > { %v748_v47 = vcombine.low %v737_v26, %v741_v46  ;;  %v749_v48 = vcombine.high %v737_v26, %v741_v46  ;;  %v739_v49 = vpop.permute.xlu0 %738  ;;  %v1354_v46 = vsel %vm1306_vm8, %v1300_v44, 0 }
 0x5f1   : > { %v756_v53 = vrot.slane %v748_v47, %v2584_v38  ;;  %v763_v54 = vrot.slane %v749_v48, %v2584_v38  ;;  %v1302_v47 = vld [vmem:[#allocation11 + $0xc] sm:$0xf] }
 0x5f2   : > { %v743_v50 = vpop.permute.xlu1 %742 }
 0x5f3   : > { %v764_v51 = vcombine.low %v739_v49, %v743_v50  ;;  %v765_v52 = vcombine.high %v739_v49, %v743_v50 }
 0x5f5   : > { %v772_v55 = vrot.slane %v764_v51, %v2584_v38  ;;  %v779_v56 = vrot.slane %v765_v52, %v2584_v38  ;;  %v1931_v15 = vpop.eup %1930 }
 0x5f6   : > { %v1933_v16 = vpop.eup %1932  ;;  %v1098_v24 = vmul.f32 %v1931_v15, %v2649_v31 }
 0x5f7   : > { %v780_v57 = vcombine.low %v756_v53, %v772_v55  ;;  %v781_v58 = vcombine.high %v756_v53, %v772_v55  ;;  %v796_v59 = vcombine.low %v763_v54, %v779_v56  ;;  %v1099_v25 = vmul.f32 %v1933_v16, %v2651_v32 }
 0x5f8   : > { %v1446_v55 = vsel %vm1306_vm8, %v1302_v47, 0 }
 0x5f9   : > { %v788_v60 = vrot.slane %v780_v57, %v2590_v45  ;;  %v795_v61 = vrot.slane %v781_v58, %v2590_v45  ;;  %v821_v62 = vrot.slane %v796_v59, %v2590_v45  ;;  %v1103_v22 = vpack.c.bf16 %v1099_v25, %v1099_v25 }
 0x5fb   : > { %v799_v63 = vcombine.low %v788_v60, %v795_v61  ;;  %v1674_v1 = vcombine.high %v788_v60, %v795_v61  ;;  %v828_v2 = vrot.slane %v821_v62, %v2584_v38 }
 0x5fd   : > { %v806_v3 = vrot.slane %v799_v63, %v2584_v38  ;;  %v814_v4 = vrot.slane %v1674_v1, %v2584_v38  ;;  %v845_v5 = vcombine.high %v828_v2, %v2225_v8  ;;  %v852_v11 = vrot.slane %v828_v2, %v2590_v45 }
 0x5ff   : > { %v829_v6 = vcombine.low %v806_v3, %v814_v4  ;;  %v830_v7 = vcombine.high %v806_v3, %v814_v4  ;;  %v859_v14 = vrot.slane %v845_v5, %v2590_v45 }
 0x601   : > { %v837_v12 = vrot.slane %v829_v6, %v2590_v45  ;;  %v844_v13 = vrot.slane %v830_v7, %v2590_v45  ;;  %v1102_v45 = vpack.c.bf16 %v1098_v24, %v1098_v24 }
 0x603   : > { %v860_v17 = vcombine.low %v837_v12, %v852_v11  ;;  %v861_v18 = vcombine.high %v837_v12, %v852_v11  ;;  %v862_v38 = vcombine.low %v844_v13, %v859_v14  ;;  %v863_v19 = vcombine.high %v844_v13, %v859_v14 }
 0x605   : > { %v864_v21 = vpack.c.bf16 %v860_v17, %v860_v17  ;;  %v865_v23 = vpack.c.bf16 %v861_v18, %v861_v18  ;;  %v866_v33 = vpack.c.bf16 %v862_v38, %v862_v38  ;;  %v867_v34 = vpack.c.bf16 %v863_v19, %v863_v19 }
 0x607   : > { %v1115_v29 = vand.u32 %v1113_v20, %v864_v21  ;;  %v1161_v30 = vand.u32 %v1113_v20, %v865_v23  ;;  %v1207_v35 = vand.u32 %v1113_v20, %v866_v33  ;;  %v1253_v36 = vand.u32 %v1113_v20, %v867_v34 }
 0x609   : > { %1752 = vmatpush3.bf16.msra.mxu1 %v1115_v29  ;;  %1758 = vmatpush3.bf16.msra.mxu0 %v1161_v30  ;;  %v1687_v29 = vld [vmem:[#allocation13] ss:$0 sm:$0xff] }
 0x60a   : > { %1763 = vmatprep.subr.bf16.mxu1 %v2225_v8  ;;  %1769 = vmatprep.subr.bf16.mxu0 %v2225_v8 }
 0x60c   : > { %1754 = vmatmul.mubr.msk.bf16.vlgmr.msra.gmra.mrb[8].mxu1 %vm1106_vm7, %v1102_v45  ;;  %1760 = vmatmul.mubr.msk.bf16.vlgmr.msra.gmra.mrb[12].mxu0 %vm1106_vm7, %v1103_v22 }
 0x60d   : > { %1764 = vmatpush3.bf16.msra.mxu1 %v1207_v35  ;;  %1770 = vmatpush3.bf16.msra.mxu0 %v1253_v36 }
 0x60e   : > { %1765 = vmatprep.mubr.msk.bf16.mxu1 %vm2226_vm1, %v2225_v8  ;;  %1771 = vmatprep.mubr.msk.bf16.mxu0 %vm2226_vm1, %v2225_v8 }
 0x60f   : > { %1775 = vmatprep.subr.bf16.mxu1 %v2225_v8  ;;  %1781 = vmatprep.subr.bf16.mxu0 %v2225_v8 }
 0x620   : > { %v1090_v31 = vpop.xlane.xlu0 %1089 }
 0x621   : > { %1934 = vrcp.f32 %v1090_v31 }
 0x623   : > { %v1093_v32 = vpop.xlane.xlu1 %1092 }
 0x624   : > { %1936 = vrcp.f32 %v1093_v32 }
 0x62b   : > { %v1935_v37 = vpop.eup %1934 }
 0x62c   : > { %v1100_v39 = vmul.f32 %v1935_v37, %v2660_v41  ;;  %v1308_v41 = vsel %vm1306_vm8, %v1299_v28, 0 }
 0x62e   : > { %v1937_v40 = vpop.eup %1936  ;;  %v1104_v43 = vpack.c.bf16 %v1100_v39, %v1100_v39 }
 0x62f   : > { %v1101_v27 = vmul.f32 %v1937_v40, %v2662_v42  ;;  %v1301_v42 = vld [vmem:[#allocation11 + $0x8] sm:$0xf] }
 0x630   : > { %1766 = vmatmul.mubr.msk.bf16.vlgmr.msra.gmra.mrb[12].mxu1 %vm1106_vm7, %v1104_v43  ;;  %v1400_v54 = vsel %vm1306_vm8, %v1301_v42, 0 }
 0x631   : > { %v1105_v26 = vpack.c.bf16 %v1101_v27, %v1101_v27  ;;  %1777 = vmatprep.mubr.msk.bf16.mxu1 %vm2226_vm1, %v2225_v8  ;;  %1776 = vmatpush3.bf16.msra.mxu1 %v1308_v41 }
 0x632   : > { %1787 = vmatprep.subr.bf16.mxu1 %v2225_v8 }
 0x633   : > { %1772 = vmatmul.mubr.msk.bf16.vlgmr.msra.gmra.mrb[16].mxu0 %vm1106_vm7, %v1105_v26 }
 0x634   : > { %1783 = vmatprep.mubr.msk.bf16.mxu0 %vm2226_vm1, %v2225_v8  ;;  %1782 = vmatpush3.bf16.msra.mxu0 %v1354_v46 }
 0x635   : > { %1793 = vmatprep.subr.bf16.mxu0 %v2225_v8 }
 0x6df   : > { %v1151_v48 = vpop.f32.mrb[8].mxu1  ;;  %v1197_v49 = vpop.f32.mrb[12].mxu0 }
 0x6e0   : > { %v1295_v50 = vpack.c.bf16 %v1151_v48, %v1151_v48  ;;  %v1296_v51 = vpack.c.bf16 %v1197_v49, %v1197_v49  ;;  %v1755_v52 = vpop.f32.mrb[9].mxu1  ;;  %v1761_v53 = vpop.f32.mrb[13].mxu0 }
 0x6e1   : > { %v1154_v56 = vpop.f32.mrb[10].mxu1  ;;  %v1200_v57 = vpop.f32.mrb[14].mxu0 }
 0x6e2   : > { %v1756_v58 = vpop.f32.mrb[11].mxu1  ;;  %v1762_v59 = vpop.f32.mrb[15].mxu0  ;;  %1778 = vmatmul.mubr.msk.bf16.vlgmr.msra.gmra.mrb[16].mxu1 %vm868_vm3, %v1295_v50  ;;  %1784 = vmatmul.mubr.msk.bf16.vlgmr.msra.gmra.mrb[20].mxu0 %vm868_vm3, %v1296_v51 }
 0x6e3   : > { %1788 = vmatpush3.bf16.msra.mxu1 %v1400_v54  ;;  %1794 = vmatpush3.bf16.msra.mxu0 %v1446_v55 }
 0x6e4   : > { %1789 = vmatprep.mubr.msk.bf16.mxu1 %vm2226_vm1, %v2225_v8  ;;  %1795 = vmatprep.mubr.msk.bf16.mxu0 %vm2226_vm1, %v2225_v8 }
 0x703   : > { %v1243_v60 = vpop.f32.mrb[12].mxu1 }
 0x704   : > { %v1297_v61 = vpack.c.bf16 %v1243_v60, %v1243_v60  ;;  %v1767_v62 = vpop.f32.mrb[13].mxu1 }
 0x705   : > { %v1246_v63 = vpop.f32.mrb[14].mxu1 }
 0x706   : > { %v1768_v1 = vpop.f32.mrb[15].mxu1  ;;  %1790 = vmatmul.mubr.msk.bf16.vlgmr.msra.gmra.mrb[20].mxu1 %vm868_vm3, %v1297_v61  ;;  %v1289_v2 = vpop.f32.mrb[16].mxu0 }
 0x707   : > { %v1298_v3 = vpack.c.bf16 %v1289_v2, %v1289_v2  ;;  %v1773_v4 = vpop.f32.mrb[17].mxu0 }
 0x708   : > { %v1292_v5 = vpop.f32.mrb[18].mxu0 }
 0x709   : > { %v1774_v6 = vpop.f32.mrb[19].mxu0  ;;  %1796 = vmatmul.mubr.msk.bf16.vlgmr.msra.gmra.mrb[24].mxu0 %vm868_vm3, %v1298_v3 }
 0x7b5   : > { %v1344_v7 = vpop.f32.mrb[16].mxu1  ;;  %v1390_v9 = vpop.f32.mrb[20].mxu0 }
 0x7b6   : > { %v1488_v10 = vsel %vm375_vm0, %v1344_v7, 0.0  ;;  %v1489_v8 = vsel %vm375_vm0, %v1390_v9, 0.0  ;;  %v1779_v11 = vpop.f32.mrb[17].mxu1  ;;  %v1785_v12 = vpop.f32.mrb[21].mxu0 }
 0x7b7   : > { %v1490_v13 = vadd.f32 %v1489_v8, %v1488_v10  ;;  %v1347_v14 = vpop.f32.mrb[18].mxu1  ;;  %v1393_v15 = vpop.f32.mrb[22].mxu0 }
 0x7b8   : > { %v1780_v16 = vpop.f32.mrb[19].mxu1  ;;  %v1786_v17 = vpop.f32.mrb[23].mxu0 }
 0x7d9   : > { %v1436_v18 = vpop.f32.mrb[20].mxu1 }
 0x7da   : > { %v1491_v38 = vsel %vm375_vm0, %v1436_v18, 0.0  ;;  %v1791_v19 = vpop.f32.mrb[21].mxu1 }
 0x7db   : > { %v1492_v20 = vadd.f32 %v1491_v38, %v1490_v13  ;;  %v1439_v21 = vpop.f32.mrb[22].mxu1 }
 0x7dc   : > { %v1792_v23 = vpop.f32.mrb[23].mxu1  ;;  %v1482_v24 = vpop.f32.mrb[24].mxu0 }
 0x7dd   : > { %v1493_v25 = vsel %vm375_vm0, %v1482_v24, 0.0  ;;  %v1797_v30 = vpop.f32.mrb[25].mxu0 }
 0x7de   : > { %v1494_v33 = vadd.f32 %v1493_v25, %v1492_v20  ;;  %v1485_v34 = vpop.f32.mrb[26].mxu0 }
 0x7df   : > { %v1798_v45 = vpop.f32.mrb[27].mxu0 }
 0x7e0   : > { %v1502_v22 = vadd.f32 %v1687_v29, %v1494_v33 }
 0x7e2   : > { %v1503_v35 = vadd.f32 %v1502_v22, %v2551_v0 }
 0x7e4   : > { %1504 = vst.msk [vmem:[%s372_s23] sm:$0x1f] %vm375_vm0, %v1503_v35 }
 0x7e5   : > { %2149 = shalt.err (!%p2146_p0)
}
 0x7e6   : > { %s2150_s13 = scalar_lea.hbm %s2728_s29, 128  ;;  %s2154_s19 = scalar_lea.hbm %s2780_s7, 256 }
 0x7e7   : > { %p2151_p10 = scmp.ne.s32.totalorder %s2728_s29, %s2150_s13  ;;  %p2155_p8 = scmp.lt.u32.totalorder %s2728_s29, %s2780_s7 }
 0x7e8   : > { %p2156_p5 = scmp.lt.u32.totalorder %s2154_s19, %s2150_s13  ;;  %p2158_p6 = scmp.lt.u32.totalorder %s2150_s13, %s2728_s29 }
 0x7e9   : > { %p2152_p11 = pnand %p2151_p10, %p2800_p9 }
 0x7ea   : > { %p2157_p7 = por %p2156_p5, %p2155_p8 }
 0x7eb   : > { %p2153_p12 = pneg %p2152_p11 }
 0x7ec   : > { %p2159_p4 = por %p2158_p6, %p2157_p7 }
 0x7ee   : > { %p2160_p13 = pnand %p2159_p4, %p2153_p12 }
 0x7f0   : > { %2163 = shalt.err (!%p2160_p13)
}
 0x7f1   : > { %1825 = dma.vmem_to_hbm [thread:$0]  (%p2800_p9), %s2730_s10, 128, %s2728_s29, %s1506_s12  }
 0x7f2 PF: > { %s1531_s15 = sand.u32 1, %s2202_s24   ;;  %p2801_p1 = scmp.ne.s32.totalorder %s2791_s14, 0 }
 0x7f3   : > { %p2802_p3 = scmp.ge.s32.totalorder %s2214_s27, 2  ;;  %s1532_s16 = scalar_lea.sflag [#allocation4], %s1531_s15 }
 0x7f5   : > { %p1851_p2 = pnand %p2802_p3, %p2801_p1 }
 0x7f7   : > { %2197 = dma.done.wait (!%p1851_p2), %s1532_s16, 128  }
 0x7f8   : > { %2199 = vsyncadd (!%p1851_p2), %s1532_s16, 4294967168  ;;  %p23_p0 = scmp.ge.s32.totalorder %s2453_s11, 4   ;;  %s2803_s24 = smov %s2206_s25 }
 0x7f9   : > { %s2804_s25 = smov %s2210_s26  ;;  %s2805_s26 = smov %s2464_s21 }
 0x7fa   : > { %s2806_s27 = smov %s2453_s11  ;;  %25 = sbr.rel (!%p23_p0) target bundleno = 8 (0x8), region = 117 }
 0x801   :  { %1537 = vsyncpa [#allocation3], 1 }
 0x802   :  { %1539 = vsyncpa [#allocation3 + $0x1], 1 }
 0x803   :  { %1540 = vsyncpa [#allocation6], 1 }
 0x804   :  { %1541 = vsyncpa [#allocation9], 1 }
 0x805   :  { %1542 = vsyncpa [#allocation12], 1 }
 0x806   :  { %1543 = vsyncpa [#allocation4], 1 }
 0x807   :  { %1545 = vsyncpa [#allocation4 + $0x1], 1 }

// kernel: deepfake_vit_forward.11
= control target key start
LH: loop header
LB: loop body
LE: loop exit
PB: predicated region body
PF: predicated region fallthrough
CT: control target
= control target key end

     0   :  { %vm47_vm0 = vcmask 254976   ;;  %s1205_s0 = inlined_call_operand.vmem [shape: f32[2,32], index: 0, kind: input, shape index: {}]   ;;  %s1206_s1 = inlined_call_operand.vmem [shape: f32[1,32], index: 1, kind: input, shape index: {}]   ;;  %s1207_s2 = inlined_call_operand.vmem [shape: f32[1,32], index: 2, kind: input, shape index: {}]   ;;  %s1208_s3 = inlined_call_operand.vmem [shape: bf16[32,32], index: 3, kind: input, shape index: {}]   ;;  %s1209_s4 = inlined_call_operand.vmem [shape: f32[1,32], index: 4, kind: input, shape index: {}]   ;;  %s1210_s5 = inlined_call_operand.vmem [shape: bf16[32,512], index: 5, kind: input, shape index: {}]   ;;  %s1211_s6 = inlined_call_operand.vmem [shape: f32[1,512], index: 6, kind: input, shape index: {}]   ;;  %s1212_s7 = inlined_call_operand.vmem [shape: f32[1,512], index: 7, kind: input, shape index: {}]   ;;  %s1213_s8 = inlined_call_operand.vmem [shape: f32[1,512], index: 8, kind: input, shape index: {}]   ;;  %s1214_s9 = inlined_call_operand.vmem [shape: f32[1,512], index: 9, kind: input, shape index: {}]   ;;  %s1215_s10 = inlined_call_operand.vmem [shape: f32[1,512], index: 10, kind: input, shape index: {}]   ;;  %s1216_s11 = inlined_call_operand.vmem [shape: bf16[512,2], index: 11, kind: input, shape index: {}]   ;;  %s1217_s12 = inlined_call_operand.vmem [shape: f32[1,2], index: 12, kind: input, shape index: {}]   ;;  %s1218_s13 = inlined_call_operand.hbm [shape: f32[2,2], index: 13, kind: output, shape index: {}]  }
   0x1   :  { %v46_v0 = vld [vmem:[%s1205_s0] sm:$0x3] }
   0x2   :  { %v48_v1 = vsel %vm47_vm0, %v46_v0, 0.0 }
   0x3   :  { %49 = vadd.xlane.f32.xlu0 %v48_v1 }
   0x4   :  { %18 = vsyncpa [#allocation3], 0  ;;  %v884_v7 = vld [vmem:[%s1208_s3] sm:$0xff]   ;;  %v960_v8 = vmov 0.0   ;;  %v885_v9 = vld [vmem:[%s1208_s3 + $0x8] sm:$0xff]   ;;  %vm961_vm1 = vmmov 0  }
   0x5   :  { %872 = vmatprep.subr.bf16.mxu0 %v960_v8  ;;  %876 = vmatprep.mubr.msk.bf16.mxu0 %vm961_vm1, %v960_v8  ;;  %v776_v14 = vld [vmem:[%s1206_s1] ss:$0 sm:$0xff]  ;;  %vm102_vm2 = vcmask 261120   ;;  %v886_v20 = vld [vmem:[%s1210_s5 + $0x4] ss:$16 sps:$4 sm:$0xff]   ;;  %v962_v28 = vmov 0  }
   0x6   :  { %873 = vmatpush3.bf16.msra.mxu0 %v884_v7  ;;  %v777_v16 = vld [vmem:[%s1207_s2] ss:$0 sm:$0xff]  ;;  %v890_v21 = vld [vmem:[%s1210_s5 + $0xc] ss:$16 sps:$4 sm:$0xff]   ;;  %v888_v22 = vld [vmem:[%s1210_s5 + $0x8] ss:$16 sps:$4 sm:$0xff]   ;;  %221 = vmatprep.subr.bf16.mxu1 %v886_v20 }
   0x7   :  { %874 = vmatprep.subr.bf16.mxu0 %v960_v8  ;;  %v891_v23 = vld [vmem:[%s1210_s5] ss:$16 sps:$4 sm:$0xff]   ;;  %v892_v24 = vld [vmem:[%s1210_s5 + $0x24] ss:$16 sps:$4 sm:$0xff]   ;;  %v896_v25 = vld [vmem:[%s1210_s5 + $0x2c] ss:$16 sps:$4 sm:$0xff]   ;;  %253 = vmatprep.mubr.bf16.mxu1 %v962_v28 }
   0x8   :  { %222 = vmatpush1.bf16.msra.mxu1 %v891_v23  ;;  %v894_v26 = vld [vmem:[%s1210_s5 + $0x28] ss:$16 sps:$4 sm:$0xff]   ;;  %v897_v27 = vld [vmem:[%s1210_s5 + $0x20] ss:$16 sps:$4 sm:$0xff]   ;;  %s963_s15 = smov [#allocation2]   ;;  %vm760_vm3 = vcmask 9216  }
   0x9   :  { %223 = vmatprep.subr.bf16.mxu1 %v892_v24  ;;  %v898_v29 = vld [vmem:[%s1216_s11 + $0x40] sm:$0xff]   ;;  %v902_v41 = vld [vmem:[%s1216_s11 + $0x48] sm:$0xff]   ;;  %v906_v45 = vld [vmem:[%s1216_s11 + $0x50] sm:$0xff]   ;;  %s768_s16 = sshll.u32 %s963_s15, 4  ;;  %s769_s16 = int_to_ptr.vmem [resolvable:$true] %s768_s16 }
   0xa   :  { %875 = vmatpush3.bf16.msra.mxu0 %v885_v9  ;;  %v899_v30 = vld [vmem:[%s1216_s11 + $0xc0] sm:$0xff]   ;;  %v903_v42 = vld [vmem:[%s1216_s11 + $0xc8] sm:$0xff]   ;;  %v907_v46 = vld [vmem:[%s1216_s11 + $0xd0] sm:$0xff]   ;;  %s936_s3 = scalar_lea.vmem %s769_s16, 32  ;;  %p941_p1 = scmp.lt.s32.totalorder %s769_s16, %s769_s16 }
   0xb   :  { %262 = vmatprep.subr.bf16.mxu0 %v890_v21  ;;  %v778_v31 = vld [vmem:[%s1209_s4] ss:$0 sm:$0xff]  ;;  %v904_v43 = vld [vmem:[%s1216_s11 + $0x8] sm:$0xff]   ;;  %v908_v47 = vld [vmem:[%s1216_s11 + $0x10] sm:$0xff]   ;;  %p937_p0 = scmp.ne.s32.totalorder %s769_s16, %s936_s3  ;;  %p942_p2 = scmp.lt.s32.totalorder %s936_s3, %s936_s3 }
   0xc   :  { %224 = vmatpush1.bf16.msra.mxu1 %v897_v27  ;;  %v900_v38 = vld [vmem:[%s1216_s11] sm:$0xff]   ;;  %v905_v44 = vld [vmem:[%s1216_s11 + $0x88] sm:$0xff]   ;;  %v909_v48 = vld [vmem:[%s1216_s11 + $0x90] sm:$0xff]  }
   0xd   :  { %828 = vmatprep.subr.bf16.mxu1 %v898_v29  ;;  %v901_v39 = vld [vmem:[%s1216_s11 + $0x80] sm:$0xff]   ;;  %v910_v49 = vld [vmem:[%s1216_s11 + $0x58] sm:$0xff]   ;;  %v918_v57 = vld [vmem:[%s1216_s11 + $0x68] sm:$0xff]   ;;  %p943_p3 = por %p942_p2, %p941_p1 }
   0xe   :  { %v911_v50 = vld [vmem:[%s1216_s11 + $0xd8] sm:$0xff]   ;;  %v914_v53 = vld [vmem:[%s1216_s11 + $0x60] sm:$0xff]   ;;  %v919_v58 = vld [vmem:[%s1216_s11 + $0xe8] sm:$0xff]  }
   0xf   :  { %v912_v51 = vld [vmem:[%s1216_s11 + $0x18] sm:$0xff]   ;;  %v915_v54 = vld [vmem:[%s1216_s11 + $0xe0] sm:$0xff]   ;;  %v920_v59 = vld [vmem:[%s1216_s11 + $0x28] sm:$0xff]   ;;  %p944_p4 = pnand %p943_p3, %p937_p0 }
  0x10   :  { %v913_v52 = vld [vmem:[%s1216_s11 + $0x98] sm:$0xff]   ;;  %v916_v55 = vld [vmem:[%s1216_s11 + $0x20] sm:$0xff]   ;;  %v921_v60 = vld [vmem:[%s1216_s11 + $0xa8] sm:$0xff]  }
  0x11   :  { %v917_v56 = vld [vmem:[%s1216_s11 + $0xa0] sm:$0xff]   ;;  %v922_v61 = vld [vmem:[%s1216_s11 + $0x70] sm:$0xff]   ;;  %v926_v1 = vld [vmem:[%s1216_s11 + $0x78] sm:$0xff]  }
  0x12   :  { %v923_v62 = vld [vmem:[%s1216_s11 + $0xf0] sm:$0xff]  }
  0x13   :  { %v924_v63 = vld [vmem:[%s1216_s11 + $0x30] sm:$0xff]  }
  0x90   :  { %v50_v2 = vpop.xlane.xlu0 %49 }
  0x91   :  { %v52_v3 = vmul.f32 0.03125, %v50_v2  ;;  %v927_v2 = vld [vmem:[%s1216_s11 + $0xf8] sm:$0xff]  }
  0x93   :  { %v53_v4 = vsub.f32 %v46_v0, %v52_v3  ;;  %v925_v0 = vld [vmem:[%s1216_s11 + $0xb0] sm:$0xff]   ;;  %v928_v3 = vld [vmem:[%s1216_s11 + $0x38] sm:$0xff]  }
  0x95   :  { %v54_v5 = vmul.f32 %v53_v4, %v53_v4 }
  0x97   :  { %v55_v6 = vsel %vm47_vm0, %v54_v5, 0.0  ;;  %v333_v5 = vld [vmem:[%s1215_s10] sm:$0xf] }
  0x98   :  { %56 = vadd.xlane.f32.xlu0 %v55_v6  ;;  %v158_v6 = vlaneseq  ;;  %v334_v7 = vadd.f32 1e-05, %v333_v5 }
  0x9a   :  { %v159_v8 = vshrl.u32 %v158_v6, 7 }
  0x9c   :  { %v160_v9 = vsub.s32 0, %v159_v8 }
 0x125   :  { %v57_v10 = vpop.xlane.xlu0 %56 }
 0x126   :  { %v58_v11 = vmul.f32 0.03125, %v57_v10  ;;  %v168_v10 = vsub.s32 2, %v159_v8 }
 0x128   :  { %v59_v12 = vadd.f32 1e-12, %v58_v11  ;;  %v156_v11 = vld [vmem:[%s1211_s6] sm:$0xf] }
 0x12a   :  { %930 = vrsqrt.f32 %v59_v12  ;;  %v164_v12 = vsub.s32 1, %v159_v8 }
 0x134   :  { %v931_v13 = vpop.eup %930 }
 0x135   :  { %v61_v15 = vmul.f32 %v931_v13, %v53_v4  ;;  %v929_v4 = vld [vmem:[%s1216_s11 + $0xb8] sm:$0xff]   ;;  %v172_v13 = vsub.s32 3, %v159_v8 }
 0x137   :  { %v69_v17 = vmul.f32 %v776_v14, %v61_v15  ;;  %v161_v14 = vrot.slane %v156_v11, %v160_v9  ;;  %v169_v15 = vrot.slane %v156_v11, %v168_v10 }
 0x139   :  { %v77_v18 = vadd.f32 %v777_v16, %v69_v17  ;;  %v307_v16 = vld [vmem:[%s1214_s9] sm:$0xf]  ;;  %v165_v17 = vrot.slane %v156_v11, %v164_v12 }
 0x13a   :  { %v312_v23 = vrot.slane %v307_v16, %v160_v9 }
 0x13b   :  { %v78_v19 = vpack.c.bf16 %v77_v18, %v77_v18  ;;  %v173_v18 = vrot.slane %v156_v11, %v172_v13 }
 0x13d   :  { %877 = vmatmul.mubr.msk.bf16.vlgmr.msra.gmra.mrb[0].mxu0 %vm102_vm2, %v78_v19 }
 0x13e   :  { %263 = vmatpush1.bf16.msra.mxu0 %v888_v22  ;;  %294 = vmatprep.mubr.bf16.mxu0 %v962_v28  ;;  %v361_v28 = vld [vmem:[%s1212_s7] sm:$0xf] }
 0x13f   :  { %264 = vmatprep.subr.bf16.mxu0 %v896_v25  ;;  %v320_v25 = vrot.slane %v307_v16, %v168_v10 }
 0x142   :  { %265 = vmatpush1.bf16.msra.mxu0 %v894_v26 }
 0x143   :  { %850 = vmatprep.subr.bf16.mxu0 %v899_v30  ;;  %v316_v30 = vrot.slane %v307_v16, %v164_v12 }
 0x210   :  { %v140_v32 = vpop.f32.mrb[0].mxu0 }
 0x211   :  { %v141_v33 = vadd.f32 %v778_v31, %v140_v32  ;;  %v878_v34 = vpop.f32.mrb[1].mxu0  ;;  %v324_v32 = vrot.slane %v307_v16, %v172_v13 }
 0x212   :  { %v143_v35 = vpop.f32.mrb[2].mxu0 }
 0x213   :  { %932 = vtanh.f32 %v141_v33  ;;  %v879_v36 = vpop.f32.mrb[3].mxu0 }
 0x214   :  { %934 = vrsqrt.f32 %v334_v7 }
 0x21d   :  { %v933_v37 = vpop.eup %932 }
 0x21e   :  { %v147_v40 = vpack.c.bf16 %v933_v37, %v933_v37  ;;  %v935_v19 = vpop.eup %934 }
 0x21f   :  { %v340_v36 = vrot.slane %v935_v19, %v160_v9 }
 0x220   :  { %790 = vmatmul.mubr.msk.bf16.vlgmr.msra.gmra.mrb[0].mxu1 %vm102_vm2, %v147_v40  ;;  %791 = vmatmul.mubr.msk.bf16.vlgmr.msra.gmra.mrb[4].mxu0 %vm102_vm2, %v147_v40 }
 0x221   :  { %829 = vmatpush3.bf16.msra.mxu1 %v900_v38  ;;  %851 = vmatpush3.bf16.msra.mxu0 %v901_v39  ;;  %v348_v38 = vrot.slane %v935_v19, %v168_v10 }
 0x222   :  { %830 = vmatprep.subr.bf16.mxu1 %v902_v41  ;;  %852 = vmatprep.subr.bf16.mxu0 %v903_v42  ;;  %v344_v42 = vrot.slane %v935_v19, %v164_v12 }
 0x225   :  { %831 = vmatpush3.bf16.msra.mxu1 %v904_v43  ;;  %853 = vmatpush3.bf16.msra.mxu0 %v905_v44  ;;  %v352_v44 = vrot.slane %v935_v19, %v172_v13 }
 0x226   :  { %832 = vmatprep.subr.bf16.mxu1 %v906_v45  ;;  %854 = vmatprep.subr.bf16.mxu0 %v907_v46  ;;  %v387_v45 = vld [vmem:[%s1213_s8] sm:$0xf] }
 0x229   :  { %833 = vmatpush3.bf16.msra.mxu1 %v908_v47  ;;  %855 = vmatpush3.bf16.msra.mxu0 %v909_v48  ;;  %v366_v47 = vrot.slane %v361_v28, %v160_v9 }
 0x22a   :  { %834 = vmatprep.subr.bf16.mxu1 %v910_v49  ;;  %856 = vmatprep.subr.bf16.mxu0 %v911_v50  ;;  %v374_v49 = vrot.slane %v361_v28, %v168_v10 }
 0x22d   :  { %835 = vmatpush3.bf16.msra.mxu1 %v912_v51  ;;  %857 = vmatpush3.bf16.msra.mxu0 %v913_v52  ;;  %v370_v52 = vrot.slane %v361_v28, %v164_v12 }
 0x22e   :  { %836 = vmatprep.subr.bf16.mxu1 %v914_v53  ;;  %858 = vmatprep.subr.bf16.mxu0 %v915_v54  ;;  %v378_v53 = vrot.slane %v361_v28, %v172_v13 }
 0x231   :  { %837 = vmatpush3.bf16.msra.mxu1 %v916_v55  ;;  %859 = vmatpush3.bf16.msra.mxu0 %v917_v56  ;;  %v392_v56 = vrot.slane %v387_v45, %v160_v9 }
 0x232   :  { %838 = vmatprep.subr.bf16.mxu1 %v918_v57  ;;  %860 = vmatprep.subr.bf16.mxu0 %v919_v58  ;;  %v400_v57 = vrot.slane %v387_v45, %v168_v10 }
 0x235   :  { %839 = vmatpush3.bf16.msra.mxu1 %v920_v59  ;;  %861 = vmatpush3.bf16.msra.mxu0 %v921_v60  ;;  %v396_v60 = vrot.slane %v387_v45, %v164_v12  ;;  %v792_v12 = vld [vmem:[%s1217_s12] ss:$0 sm:$0xff] }
 0x236   :  { %840 = vmatprep.subr.bf16.mxu1 %v922_v61  ;;  %862 = vmatprep.subr.bf16.mxu0 %v923_v62  ;;  %v404_v61 = vrot.slane %v387_v45, %v172_v13 }
 0x239   :  { %841 = vmatpush3.bf16.msra.mxu1 %v924_v63  ;;  %863 = vmatpush3.bf16.msra.mxu0 %v925_v0 }
 0x23a   :  { %842 = vmatprep.subr.bf16.mxu1 %v926_v1  ;;  %864 = vmatprep.subr.bf16.mxu0 %v927_v2 }
 0x23d   :  { %843 = vmatpush3.bf16.msra.mxu1 %v928_v3  ;;  %865 = vmatpush3.bf16.msra.mxu0 %v929_v4 }
 0x2f3   :  { %v255_v20 = vpop.f32.mrb[0].mxu1  ;;  %v296_v21 = vpop.f32.mrb[4].mxu0 }
 0x2f4   :  { %v256_v22 = vadd.f32 %v255_v20, %v161_v14  ;;  %v297_v24 = vadd.f32 %v296_v21, %v169_v15  ;;  %v257_v26 = vpop.f32.mrb[1].mxu1  ;;  %v298_v27 = vpop.f32.mrb[5].mxu0 }
 0x2f5   :  { %v258_v29 = vadd.f32 %v257_v26, %v165_v17  ;;  %v299_v31 = vadd.f32 %v298_v27, %v173_v18  ;;  %v259_v33 = vpop.f32.mrb[2].mxu1  ;;  %v300_v34 = vpop.f32.mrb[6].mxu0 }
 0x2f6   :  { %v303_v35 = vmax.f32 %v256_v22, 0.0  ;;  %v305_v37 = vmax.f32 %v297_v24, 0.0  ;;  %v260_v39 = vpop.f32.mrb[3].mxu1  ;;  %v301_v40 = vpop.f32.mrb[7].mxu0 }
 0x2f7   :  { %v304_v41 = vmax.f32 %v258_v29, 0.0  ;;  %v306_v43 = vmax.f32 %v299_v31, 0.0 }
 0x2f8   :  { %v329_v46 = vsub.f32 %v303_v35, %v312_v23  ;;  %v331_v48 = vsub.f32 %v305_v37, %v320_v25 }
 0x2f9   :  { %v330_v50 = vsub.f32 %v304_v41, %v316_v30  ;;  %v332_v51 = vsub.f32 %v306_v43, %v324_v32 }
 0x2fa   :  { %v357_v54 = vmul.f32 %v340_v36, %v329_v46  ;;  %v359_v55 = vmul.f32 %v348_v38, %v331_v48 }
 0x2fb   :  { %v358_v58 = vmul.f32 %v344_v42, %v330_v50  ;;  %v360_v59 = vmul.f32 %v352_v44, %v332_v51 }
 0x2fc   :  { %v383_v62 = vmul.f32 %v366_v47, %v357_v54  ;;  %v385_v63 = vmul.f32 %v374_v49, %v359_v55 }
 0x2fd   :  { %v384_v0 = vmul.f32 %v370_v52, %v358_v58  ;;  %v386_v1 = vmul.f32 %v378_v53, %v360_v59 }
 0x2fe   :  { %v409_v2 = vadd.f32 %v392_v56, %v383_v62  ;;  %v411_v3 = vadd.f32 %v400_v57, %v385_v63 }
 0x2ff   :  { %v410_v4 = vadd.f32 %v396_v60, %v384_v0  ;;  %v412_v5 = vadd.f32 %v404_v61, %v386_v1 }
 0x300   :  { %v413_v8 = vpack.c.bf16 %v409_v2, %v409_v2  ;;  %v415_v11 = vpack.c.bf16 %v411_v3, %v411_v3 }
 0x301   :  { %v414_v6 = vpack.c.bf16 %v410_v4, %v410_v4  ;;  %v416_v7 = vpack.c.bf16 %v412_v5, %v412_v5 }
 0x303   :  { %712 = vmatprep.mubr.bf16.mxu1 %v414_v6  ;;  %752 = vmatprep.mubr.bf16.mxu0 %v416_v7 }
 0x304   :  { %713 = vmatmul.mubr.bf16.vlgmr.msra.gmra.mrb[4].mxu1 %v413_v8  ;;  %753 = vmatmul.mubr.bf16.vlgmr.msra.gmra.mrb[8].mxu0 %v415_v11 }
 0x3d7   :  { %v844_v9 = vpop.f32.mrb[4].mxu1  ;;  %v866_v10 = vpop.f32.mrb[8].mxu0 }
 0x3d8   :  { %v845_v13 = vpop.f32.mrb[5].mxu1  ;;  %v867_v14 = vpop.f32.mrb[9].mxu0 }
 0x3d9   :  { %v846_v15 = vadd.f32 %v845_v13, %v844_v9  ;;  %v868_v16 = vadd.f32 %v867_v14, %v866_v10  ;;  %v847_v17 = vpop.f32.mrb[6].mxu1  ;;  %v869_v18 = vpop.f32.mrb[10].mxu0 }
 0x3da   :  { %v848_v19 = vpop.f32.mrb[7].mxu1  ;;  %v870_v20 = vpop.f32.mrb[11].mxu0 }
 0x3db   :  { %v715_v21 = vadd.f32 %v846_v15, %v792_v12 }
 0x3dd   :  { %v755_v22 = vadd.f32 %v868_v16, %v715_v21 }
 0x3df   :  { %761 = vst.msk [vmem:[#allocation2] sm:$0x3] %vm760_vm3, %v755_v22 }
 0x3e0   :  { %947 = shalt.err (!%p944_p4)
}
 0x3e1   :  { %s948_s17 = scalar_lea.hbm %s1218_s13, 32 }
 0x3e2   :  { %p949_p5 = scmp.ne.s32.totalorder %s1218_s13, %s948_s17  ;;  %p952_p6 = scmp.lt.u32.totalorder %s948_s17, %s1218_s13 }
 0x3e4   :  { %p954_p7 = pnand %p952_p6, %p949_p5 }
 0x3e6   :  { %957 = shalt.err (!%p954_p7)
}
 0x3e7   :  { %771 = dma.vmem_to_hbm [thread:$0]  %s769_s16, 32, %s1218_s13, [#allocation3]  }
 0x3e8   :  { %958 = dma.done.wait [#allocation3], 32  }
 0x3e9   :  { %959 = vsyncadd [#allocation3], 4294967264 }
 0x3ea   :  { %775 = vsyncpa [#allocation3], 1 }

</bundles_post_ra>
